<compile_context>
chip_gen: v7x
topology: tpu7x:2x2x1
jax: 0.10.0
libtpu: 0.0.40
codegen_flags: <defaults>
</compile_context>

<pallas_src>
import functools

import numpy as np
import jax
import jax.numpy as jnp
from jax.experimental import pallas as pl
from jax.experimental.pallas import tpu as pltpu


# --------------------------------------------------------------------------
# Hardware / feature probes (run once, cached).
# --------------------------------------------------------------------------
def _tpu_hw():
    """Return (num_tensorcores, physical_vmem_bytes) for the attached TPU."""
    vmem_cap = 64 * 1024 * 1024     # conservative fallback (v7x-sized)
    num_tc = 1
    try:
        info = pltpu.get_tpu_info()
        vmem_cap = int(getattr(info, "vmem_capacity_bytes", vmem_cap))
    except Exception:
        pass
    try:
        kind = jax.devices()[0].device_kind.lower()
        # v4 / v5p megacore and v7x have 2 TensorCores per device.
        if ("v4" in kind) or ("v5p" in kind) or ("v7" in kind):
            num_tc = 2
    except Exception:
        pass
    return num_tc, vmem_cap


@functools.lru_cache(maxsize=1)
def _single_buffer_supported():
    """True iff pl.Buffered(1) single-buffered input blocks lower and produce
    correct results on this jax/libtpu build (probed with a tiny kernel)."""
    try:
        spec = pl.BlockSpec((8, 128), lambda i: (0, 0),
                            pipeline_mode=pl.Buffered(1))

        def _probe(x_ref, o_ref):
            o_ref[...] = x_ref[...] + 1.0

        fn = pl.pallas_call(
            _probe,
            out_shape=jax.ShapeDtypeStruct((8, 128), jnp.float32),
            grid=(2,),
            in_specs=[spec],
            out_specs=pl.BlockSpec((8, 128), lambda i: (0, 0)),
        )
        x = jnp.arange(8 * 128, dtype=jnp.float32).reshape(8, 128)
        return bool(jnp.all(fn(x) == x + 1.0))
    except Exception:
        return False


# --------------------------------------------------------------------------
# DFT constants (built once per size/dtype; no per-call host work).
# --------------------------------------------------------------------------
@functools.lru_cache(maxsize=None)
def _dft_consts(n, dtype):
    """Ortho-normalized n-point DFT matrix split as (re, im), pre-cast to the
    MXU operand dtype (bf16 by default)."""
    k = np.arange(n)
    wmat = np.exp(-2j * np.pi * np.outer(k, k) / n) / np.sqrt(n)
    fr = np.ascontiguousarray(wmat.real).astype(np.float32)
    fi = np.ascontiguousarray(wmat.imag).astype(np.float32)
    return jnp.asarray(fr, dtype=dtype), jnp.asarray(fi, dtype=dtype)


# --------------------------------------------------------------------------
# Grid / coil-group selection (generation + VMEM aware).
# --------------------------------------------------------------------------
def _vmem_bytes_per_step(cg, h, w, const_bytes, single_buffered_consts):
    per_coil = cg * h * w
    est = 16 * per_coil          # maps re/im input blocks (f32, double-buffered)
    est += 16 * per_coil         # output re/im blocks (f32, double-buffered)
    est += 24 * h * w            # x re/im + mask blocks (f32, double-buffered)
    est += 32 * per_coil         # in-kernel temps: zr/zi, bf16 casts, W-DFT results
    est += 16 * h * w            # per-coil H-DFT partials
    est += const_bytes * (1 if single_buffered_consts else 2)
    return est


def _choose_coil_grouping(B, C, H, W, num_tc, vmem_limit, const_bytes):
    """Pick (NG, CG) with C = NG * CG.

    Single-TC chips (v5e/v6e): fold as many coils as fit (NG=1 ideally) ->
    fewest grid steps, best DMA amortization.
    Dual-TC chips (v7x): keep >=2 grid steps so neither core idles, prefer
    B-major sharding when B>=2 (x/mask fetched once per batch), cap CG<=2
    (bounds the unrolled per-coil live ranges / VMEM).
    """
    budget = int(vmem_limit * 0.75)
    single = _single_buffer_supported()
    max_cg = C if num_tc == 1 else min(C, 2)
    candidates = [d for d in range(max_cg, 0, -1) if C % d == 0]
    chosen = 1
    for cg in candidates:
        ng = C // cg
        if num_tc > 1 and (B * ng) < num_tc and cg != 1:
            continue                       # not enough steps to feed both cores
        if _vmem_bytes_per_step(cg, H, W, const_bytes, single) <= budget:
            chosen = cg
            break
    # If even CG=1 does not fit the budget we still run with CG=1; see the
    # column-tiling TODO at the top of the file.
    return C // chosen, chosen


# --------------------------------------------------------------------------
# Kernel: one (batch, coil-group) tile.
# --------------------------------------------------------------------------
def _sense_forw_kernel(x_re, x_im, m_re, m_im, mask,
                       fhr, fhi, fwr, fwi,
                       o_re, o_im):
    """Ref shapes:
      x_re/x_im/mask : (H, W)      f32
      m_re/m_im      : (CG, H, W)  f32
      fhr/fhi        : (H, H)      compute dtype (bf16)  -- row DFT
      fwr/fwi        : (W, W)      compute dtype (bf16)  -- col DFT (symmetric)
      o_re/o_im      : (CG, H, W)  f32
    """
    cg, h, w = m_re.shape

    xr = x_re[...]
    xi = x_im[...]
    mk = mask[...]
    mr = m_re[...]
    mi = m_im[...]

    fwr_v = fwr[...]
    fwi_v = fwi[...]
    bf = fwr_v.dtype

    # maps_forw: z = x[:, None, ...] * maps   (complex elementwise, f32 VPU)
    zr = xr[None] * mr - xi[None] * mi          # (CG, H, W)
    zi = xr[None] * mi + xi[None] * mr

    # ---- DFT along W (right-multiply by symmetric F_W). Coils folded into the
    # MXU M dimension: (CG*H, W) @ (W, W). Plain 4-matmul complex product
    # (MXU has slack; better accuracy / less VPU & VMEM than the Gauss trick).
    zr_b = zr.reshape(cg * h, w).astype(bf)
    zi_b = zi.reshape(cg * h, w).astype(bf)

    rr = jnp.dot(zr_b, fwr_v, preferred_element_type=jnp.float32)
    ii = jnp.dot(zi_b, fwi_v, preferred_element_type=jnp.float32)
    tr = (rr - ii).reshape(cg, h, w)
    ri = jnp.dot(zr_b, fwi_v, preferred_element_type=jnp.float32)
    ir = jnp.dot(zi_b, fwr_v, preferred_element_type=jnp.float32)
    ti = (ri + ir).reshape(cg, h, w)

    fhr_v = fhr[...]
    fhi_v = fhi[...]

    # ---- DFT along H (left-multiply by F_H), per coil of the group.  CG is
    # capped at 2 on dual-TC chips so the unrolled live ranges stay small; the
    # real plane is masked + stored before the imag matmuls to shorten them.
    for c in range(cg):
        tcr = tr[c].astype(bf)
        tci = ti[c].astype(bf)
        u_rr = jnp.dot(fhr_v, tcr, preferred_element_type=jnp.float32)
        u_ii = jnp.dot(fhi_v, tci, preferred_element_type=jnp.float32)
        o_re[c] = (u_rr - u_ii) * mk            # mask_forw (real)
        u_ri = jnp.dot(fhr_v, tci, preferred_element_type=jnp.float32)
        u_ir = jnp.dot(fhi_v, tcr, preferred_element_type=jnp.float32)
        o_im[c] = (u_ri + u_ir) * mk            # mask_forw (imag)


# --------------------------------------------------------------------------
# Wrappers.
# --------------------------------------------------------------------------
def sense_forward_planar(x_re, x_im, m_re, m_im, mask,
                         *, compute_dtype=jnp.bfloat16):
    """Fast path: planar complex (separate re/im f32 planes) in and out.

    No complex de/interleave copies are made -- keep re/im planar in the
    surrounding model to stay on this path.
    Returns (y_re, y_im), each f32 [B, C, H, W].
    """
    B, C, H, W = m_re.shape
    assert x_re.shape == (B, H, W) and x_im.shape == (B, H, W)
    assert mask.shape == (B, H, W)

    num_tc, vmem_cap = _tpu_hw()
    # ~112 MiB on 128-MiB-VMEM chips (v5e/v6e), ~56 MiB on v7x (64 MiB).
    vmem_limit = max(32 << 20, min(vmem_cap - (8 << 20), 112 << 20))

    fh_re, fh_im = _dft_consts(H, compute_dtype)
    fw_re, fw_im = _dft_consts(W, compute_dtype)
    const_bytes = 2 * (H * H + W * W) * np.dtype(compute_dtype).itemsize

    NG, CG = _choose_coil_grouping(B, C, H, W, num_tc, vmem_limit, const_bytes)

    # x/mask block indices do not depend on g (the fastest grid axis), so they
    # are not re-DMA'd between coil-group steps of the same batch.
    img_spec = pl.BlockSpec((None, H, W), lambda b, g: (b, 0, 0))
    coil_spec = pl.BlockSpec((None, CG, H, W), lambda b, g: (b, g, 0, 0))

    # DFT constants never change -> single-buffer them when supported.
    if _single_buffer_supported():
        fh_spec = pl.BlockSpec((H, H), lambda b, g: (0, 0),
                               pipeline_mode=pl.Buffered(1))
        fw_spec = pl.BlockSpec((W, W), lambda b, g: (0, 0),
                               pipeline_mode=pl.Buffered(1))
    else:
        fh_spec = pl.BlockSpec((H, H), lambda b, g: (0, 0))
        fw_spec = pl.BlockSpec((W, W), lambda b, g: (0, 0))

    out_shape = (jax.ShapeDtypeStruct((B, C, H, W), jnp.float32),
                 jax.ShapeDtypeStruct((B, C, H, W), jnp.float32))

    y_re, y_im = pl.pallas_call(
        _sense_forw_kernel,
        out_shape=out_shape,
        grid_spec=pltpu.PrefetchScalarGridSpec(
            num_scalar_prefetch=0,
            grid=(B, NG),                          # coil groups fastest-varying
            in_specs=[img_spec, img_spec,          # x re/im
                      coil_spec, coil_spec,        # maps re/im
                      img_spec,                    # mask
                      fh_spec, fh_spec,            # F_H re/im
                      fw_spec, fw_spec],           # F_W re/im
            out_specs=[coil_spec, coil_spec],
        ),
        compiler_params=pltpu.CompilerParams(
            dimension_semantics=("parallel", "parallel"),
            vmem_limit_bytes=int(vmem_limit)),
    )(x_re.astype(jnp.float32), x_im.astype(jnp.float32),
      m_re.astype(jnp.float32), m_im.astype(jnp.float32),
      mask.astype(jnp.float32),
      fh_re, fh_im, fw_re, fw_im)

    return y_re, y_im


def sense_forward(x, maps, mask):
    """Complex-in/complex-out interface matching MultiChannelMRI.forward.

    NOTE: jnp.real/jnp.imag and lax.complex materialize extra HBM copies;
    prefer `sense_forward_planar` in a model that keeps re/im planar.
    """
    y_re, y_im = sense_forward_planar(
        jnp.real(x).astype(jnp.float32), jnp.imag(x).astype(jnp.float32),
        jnp.real(maps).astype(jnp.float32), jnp.imag(maps).astype(jnp.float32),
        mask.astype(jnp.float32))
    return jax.lax.complex(y_re, y_im).astype(jnp.complex64)


def sense_forward_ref(x, maps, mask):
    # Pure-JAX reference mirroring the PyTorch semantics exactly.
    z = x[:, None, ...] * maps                                   # maps_forw
    y = jnp.fft.fftn(z, axes=(-1, -2), norm="ortho")             # fft_forw
    return y * mask[:, None, ...]                                # mask_forw


if __name__ == "__main__":
    B, C, H, W = 2, 4, 16, 16
    key = jax.random.PRNGKey(0)
    k1, k2, k3, k4, k5 = jax.random.split(key, 5)

    x_re = jax.random.normal(k1, (B, H, W), jnp.float32)
    x_im = jax.random.normal(k2, (B, H, W), jnp.float32)
    m_re = jax.random.normal(k3, (B, C, H, W), jnp.float32)
    m_im = jax.random.normal(k4, (B, C, H, W), jnp.float32)
    mask = (jax.random.uniform(k5, (B, H, W)) > 0.5).astype(jnp.float32)

    # Fast planar path (no complex de/interleave copies).
    y_re, y_im = sense_forward_planar(x_re, x_im, m_re, m_im, mask)
    y_re, y_im = jax.block_until_ready((y_re, y_im))
    out = jax.lax.complex(y_re, y_im)

    # Reference.
    x = jax.lax.complex(x_re, x_im)
    maps = jax.lax.complex(m_re, m_im)
    ref = sense_forward_ref(x, maps, mask)

    assert out.shape == (B, C, H, W)
    den = jnp.sqrt(jnp.sum(jnp.abs(ref) ** 2))
    rel = float(jnp.sqrt(jnp.sum(jnp.abs(out - ref) ** 2)) / den)
    assert rel < 3e-2, f"relative L2 error too large (planar path): {rel}"

    # Complex-interface wrapper (module parity).
    out2 = jax.block_until_ready(sense_forward(x, maps, mask))
    rel2 = float(jnp.sqrt(jnp.sum(jnp.abs(out2 - ref) ** 2)) / den)
    assert out2.shape == (B, C, H, W) and out2.dtype == jnp.complex64
    assert rel2 < 3e-2, f"relative L2 error too large (complex path): {rel2}"

    print("KERNEL_OK")
</pallas_src>

<mosaic_0001>
module attributes {stable_mosaic.version = 11 : i64} {
  func.func @_probe(%arg0: i32, %arg1: memref<8x128xf32, #tpu.memory_space<vmem>>, %arg2: memref<8x128xf32, #tpu.memory_space<vmem>>) attributes {dimension_semantics = [#tpu.dimension_semantics<arbitrary>], iteration_bounds = array<i64: 2>, scalar_prefetch = 0 : i64, scratch_operands = 0 : i64, tpu.core_type = #tpu.core_type<tc>, window_params = [{pipeline_mode = #tpu.pipeline_mode<synchronous>, transform_indices = @transform_0, window_bounds = array<i64: 8, 128>}, {pipeline_mode = #tpu.pipeline_mode<synchronous>, transform_indices = @transform_1, window_bounds = array<i64: 8, 128>}]} {
    %c0 = arith.constant 0 : index
    %c0_0 = arith.constant 0 : index
    %0 = vector.load %arg1[%c0, %c0_0] : memref<8x128xf32, #tpu.memory_space<vmem>>, vector<8x128xf32>
    %cst = arith.constant 1.000000e+00 : f32
    %1 = vector.broadcast %cst : f32 to vector<8x128xf32>
    %2 = arith.addf %0, %1 : vector<8x128xf32>
    %c0_1 = arith.constant 0 : index
    %c0_2 = arith.constant 0 : index
    %3 = vector.load %arg2[%c0_1, %c0_2] : memref<8x128xf32, #tpu.memory_space<vmem>>, vector<8x128xf32>
    tpu.vector_store %arg2[%c0_1, %c0_2], %2 {strides = array<i32>} : memref<8x128xf32, #tpu.memory_space<vmem>>, vector<8x128xf32>,
    return
  }
  func.func @transform_0(%arg0: i32) -> (i32, i32) {
    %c0_i32 = arith.constant 0 : i32
    %c0_i32_0 = arith.constant 0 : i32
    %c0_i32_1 = arith.constant 0 : i32
    return %c0_i32, %c0_i32_0 : i32, i32
  }
  func.func @transform_1(%arg0: i32) -> (i32, i32) {
    %c0_i32 = arith.constant 0 : i32
    %c0_i32_0 = arith.constant 0 : i32
    %c0_i32_1 = arith.constant 0 : i32
    return %c0_i32, %c0_i32_0 : i32, i32
  }
}

module attributes {stable_mosaic.version = 11 : i64} {
  func.func @_sense_forw_kernel(%arg0: i32, %arg1: i32, %arg2: memref<1x16x16xf32, #tpu.memory_space<vmem>>, %arg3: memref<1x16x16xf32, #tpu.memory_space<vmem>>, %arg4: memref<1x4x16x16xf32, #tpu.memory_space<vmem>>, %arg5: memref<1x4x16x16xf32, #tpu.memory_space<vmem>>, %arg6: memref<1x16x16xf32, #tpu.memory_space<vmem>>, %arg7: memref<16x16xbf16, #tpu.memory_space<vmem>>, %arg8: memref<16x16xbf16, #tpu.memory_space<vmem>>, %arg9: memref<16x16xbf16, #tpu.memory_space<vmem>>, %arg10: memref<16x16xbf16, #tpu.memory_space<vmem>>, %arg11: memref<1x4x16x16xf32, #tpu.memory_space<vmem>>, %arg12: memref<1x4x16x16xf32, #tpu.memory_space<vmem>>) attributes {dimension_semantics = [#tpu.dimension_semantics<parallel>, #tpu.dimension_semantics<parallel>], iteration_bounds = array<i64: 2, 1>, scalar_prefetch = 0 : i64, scratch_operands = 0 : i64, tpu.core_type = #tpu.core_type<tc>, window_params = [{transform_indices = @transform_0, window_bounds = array<i64: 1, 16, 16>}, {transform_indices = @transform_1, window_bounds = array<i64: 1, 16, 16>}, {transform_indices = @transform_2, window_bounds = array<i64: 1, 4, 16, 16>}, {transform_indices = @transform_3, window_bounds = array<i64: 1, 4, 16, 16>}, {transform_indices = @transform_4, window_bounds = array<i64: 1, 16, 16>}, {pipeline_mode = #tpu.pipeline_mode<synchronous>, transform_indices = @transform_5, window_bounds = array<i64: 16, 16>}, {pipeline_mode = #tpu.pipeline_mode<synchronous>, transform_indices = @transform_6, window_bounds = array<i64: 16, 16>}, {pipeline_mode = #tpu.pipeline_mode<synchronous>, transform_indices = @transform_7, window_bounds = array<i64: 16, 16>}, {pipeline_mode = #tpu.pipeline_mode<synchronous>, transform_indices = @transform_8, window_bounds = array<i64: 16, 16>}, {transform_indices = @transform_9, window_bounds = array<i64: 1, 4, 16, 16>}, {transform_indices = @transform_10, window_bounds = array<i64: 1, 4, 16, 16>}]} {
    %c0 = arith.constant 0 : index
    %c0_0 = arith.constant 0 : index
    %c0_1 = arith.constant 0 : index
    %0 = vector.load %arg2[%c0, %c0_0, %c0_1] : memref<1x16x16xf32, #tpu.memory_space<vmem>>, vector<1x16x16xf32>
    %1 = vector.shape_cast %0 : vector<1x16x16xf32> to vector<16x16xf32>
    %c0_2 = arith.constant 0 : index
    %c0_3 = arith.constant 0 : index
    %c0_4 = arith.constant 0 : index
    %2 = vector.load %arg3[%c0_2, %c0_3, %c0_4] : memref<1x16x16xf32, #tpu.memory_space<vmem>>, vector<1x16x16xf32>
    %3 = vector.shape_cast %2 : vector<1x16x16xf32> to vector<16x16xf32>
    %c0_5 = arith.constant 0 : index
    %c0_6 = arith.constant 0 : index
    %c0_7 = arith.constant 0 : index
    %4 = vector.load %arg6[%c0_5, %c0_6, %c0_7] : memref<1x16x16xf32, #tpu.memory_space<vmem>>, vector<1x16x16xf32>
    %5 = vector.shape_cast %4 : vector<1x16x16xf32> to vector<16x16xf32>
    %c0_8 = arith.constant 0 : index
    %c0_9 = arith.constant 0 : index
    %c0_10 = arith.constant 0 : index
    %c0_11 = arith.constant 0 : index
    %6 = vector.load %arg4[%c0_8, %c0_9, %c0_10, %c0_11] : memref<1x4x16x16xf32, #tpu.memory_space<vmem>>, vector<1x4x16x16xf32>
    %7 = vector.shape_cast %6 : vector<1x4x16x16xf32> to vector<4x16x16xf32>
    %c0_12 = arith.constant 0 : index
    %c0_13 = arith.constant 0 : index
    %c0_14 = arith.constant 0 : index
    %c0_15 = arith.constant 0 : index
    %8 = vector.load %arg5[%c0_12, %c0_13, %c0_14, %c0_15] : memref<1x4x16x16xf32, #tpu.memory_space<vmem>>, vector<1x4x16x16xf32>
    %9 = vector.shape_cast %8 : vector<1x4x16x16xf32> to vector<4x16x16xf32>
    %c0_16 = arith.constant 0 : index
    %c0_17 = arith.constant 0 : index
    %10 = vector.load %arg9[%c0_16, %c0_17] : memref<16x16xbf16, #tpu.memory_space<vmem>>, vector<16x16xbf16>
    %c0_18 = arith.constant 0 : index
    %c0_19 = arith.constant 0 : index
    %11 = vector.load %arg10[%c0_18, %c0_19] : memref<16x16xbf16, #tpu.memory_space<vmem>>, vector<16x16xbf16>
    %12 = vector.shape_cast %1 : vector<16x16xf32> to vector<1x16x16xf32>
    %13 = vector.broadcast %12 : vector<1x16x16xf32> to vector<4x16x16xf32>
    %14 = arith.mulf %13, %7 : vector<4x16x16xf32>
    %15 = vector.shape_cast %3 : vector<16x16xf32> to vector<1x16x16xf32>
    %16 = vector.broadcast %15 : vector<1x16x16xf32> to vector<4x16x16xf32>
    %17 = arith.mulf %16, %9 : vector<4x16x16xf32>
    %18 = arith.subf %14, %17 : vector<4x16x16xf32>
    %19 = vector.shape_cast %1 : vector<16x16xf32> to vector<1x16x16xf32>
    %20 = vector.broadcast %19 : vector<1x16x16xf32> to vector<4x16x16xf32>
    %21 = arith.mulf %20, %9 : vector<4x16x16xf32>
    %22 = vector.shape_cast %3 : vector<16x16xf32> to vector<1x16x16xf32>
    %23 = vector.broadcast %22 : vector<1x16x16xf32> to vector<4x16x16xf32>
    %24 = arith.mulf %23, %7 : vector<4x16x16xf32>
    %25 = arith.addf %21, %24 : vector<4x16x16xf32>
    %26 = vector.shape_cast %18 : vector<4x16x16xf32> to vector<64x16xf32>
    %27 = arith.truncf %26 : vector<64x16xf32> to vector<64x16xbf16>
    %28 = vector.shape_cast %25 : vector<4x16x16xf32> to vector<64x16xf32>
    %29 = arith.truncf %28 : vector<64x16xf32> to vector<64x16xbf16>
    %cst = arith.constant dense<0.000000e+00> : vector<64x16xf32>
    %30 = tpu.matmul %27, %10, %cst {dimension_numbers = #tpu.dot_dimension_numbers<[1], [0], [0], [1], [0, 0, 1, 1], [], []>} : vector<64x16xbf16>, vector<16x16xbf16>, vector<64x16xf32> -> vector<64x16xf32>
    %cst_20 = arith.constant dense<0.000000e+00> : vector<64x16xf32>
    %31 = tpu.matmul %29, %11, %cst_20 {dimension_numbers = #tpu.dot_dimension_numbers<[1], [0], [0], [1], [0, 0, 1, 1], [], []>} : vector<64x16xbf16>, vector<16x16xbf16>, vector<64x16xf32> -> vector<64x16xf32>
    %32 = arith.subf %30, %31 : vector<64x16xf32>
    %33 = vector.shape_cast %32 : vector<64x16xf32> to vector<4x16x16xf32>
    %cst_21 = arith.constant dense<0.000000e+00> : vector<64x16xf32>
    %34 = tpu.matmul %27, %11, %cst_21 {dimension_numbers = #tpu.dot_dimension_numbers<[1], [0], [0], [1], [0, 0, 1, 1], [], []>} : vector<64x16xbf16>, vector<16x16xbf16>, vector<64x16xf32> -> vector<64x16xf32>
    %cst_22 = arith.constant dense<0.000000e+00> : vector<64x16xf32>
    %35 = tpu.matmul %29, %10, %cst_22 {dimension_numbers = #tpu.dot_dimension_numbers<[1], [0], [0], [1], [0, 0, 1, 1], [], []>} : vector<64x16xbf16>, vector<16x16xbf16>, vector<64x16xf32> -> vector<64x16xf32>
    %36 = arith.addf %34, %35 : vector<64x16xf32>
    %37 = vector.shape_cast %36 : vector<64x16xf32> to vector<4x16x16xf32>
    %c0_23 = arith.constant 0 : index
    %c0_24 = arith.constant 0 : index
    %38 = vector.load %arg7[%c0_23, %c0_24] : memref<16x16xbf16, #tpu.memory_space<vmem>>, vector<16x16xbf16>
    %c0_25 = arith.constant 0 : index
    %c0_26 = arith.constant 0 : index
    %39 = vector.load %arg8[%c0_25, %c0_26] : memref<16x16xbf16, #tpu.memory_space<vmem>>, vector<16x16xbf16>
    %40 = vector.extract_strided_slice %33 {offsets = [0, 0, 0], sizes = [1, 16, 16], strides = [1, 1, 1]} : vector<4x16x16xf32> to vector<1x16x16xf32>
    %41 = vector.shape_cast %40 : vector<1x16x16xf32> to vector<16x16xf32>
    %42 = arith.truncf %41 : vector<16x16xf32> to vector<16x16xbf16>
    %43 = vector.extract_strided_slice %37 {offsets = [0, 0, 0], sizes = [1, 16, 16], strides = [1, 1, 1]} : vector<4x16x16xf32> to vector<1x16x16xf32>
    %44 = vector.shape_cast %43 : vector<1x16x16xf32> to vector<16x16xf32>
    %45 = arith.truncf %44 : vector<16x16xf32> to vector<16x16xbf16>
    %cst_27 = arith.constant dense<0.000000e+00> : vector<16x16xf32>
    %46 = tpu.matmul %38, %42, %cst_27 {dimension_numbers = #tpu.dot_dimension_numbers<[1], [0], [0], [1], [0, 0, 1, 1], [], []>} : vector<16x16xbf16>, vector<16x16xbf16>, vector<16x16xf32> -> vector<16x16xf32>
    %cst_28 = arith.constant dense<0.000000e+00> : vector<16x16xf32>
    %47 = tpu.matmul %39, %45, %cst_28 {dimension_numbers = #tpu.dot_dimension_numbers<[1], [0], [0], [1], [0, 0, 1, 1], [], []>} : vector<16x16xbf16>, vector<16x16xbf16>, vector<16x16xf32> -> vector<16x16xf32>
    %48 = arith.subf %46, %47 : vector<16x16xf32>
    %49 = arith.mulf %48, %5 : vector<16x16xf32>
    %c0_29 = arith.constant 0 : index
    %c0_30 = arith.constant 0 : index
    %c0_31 = arith.constant 0 : index
    %c0_32 = arith.constant 0 : index
    %50 = vector.load %arg11[%c0_29, %c0_30, %c0_31, %c0_32] : memref<1x4x16x16xf32, #tpu.memory_space<vmem>>, vector<1x1x16x16xf32>
    %51 = vector.shape_cast %50 : vector<1x1x16x16xf32> to vector<16x16xf32>
    %52 = vector.shape_cast %49 : vector<16x16xf32> to vector<1x1x16x16xf32>
    tpu.vector_store %arg11[%c0_29, %c0_30, %c0_31, %c0_32], %52 {strides = array<i32>} : memref<1x4x16x16xf32, #tpu.memory_space<vmem>>, vector<1x1x16x16xf32>,
    %cst_33 = arith.constant dense<0.000000e+00> : vector<16x16xf32>
    %53 = tpu.matmul %38, %45, %cst_33 {dimension_numbers = #tpu.dot_dimension_numbers<[1], [0], [0], [1], [0, 0, 1, 1], [], []>} : vector<16x16xbf16>, vector<16x16xbf16>, vector<16x16xf32> -> vector<16x16xf32>
    %cst_34 = arith.constant dense<0.000000e+00> : vector<16x16xf32>
    %54 = tpu.matmul %39, %42, %cst_34 {dimension_numbers = #tpu.dot_dimension_numbers<[1], [0], [0], [1], [0, 0, 1, 1], [], []>} : vector<16x16xbf16>, vector<16x16xbf16>, vector<16x16xf32> -> vector<16x16xf32>
    %55 = arith.addf %53, %54 : vector<16x16xf32>
    %56 = arith.mulf %55, %5 : vector<16x16xf32>
    %c0_35 = arith.constant 0 : index
    %c0_36 = arith.constant 0 : index
    %c0_37 = arith.constant 0 : index
    %c0_38 = arith.constant 0 : index
    %57 = vector.load %arg12[%c0_35, %c0_36, %c0_37, %c0_38] : memref<1x4x16x16xf32, #tpu.memory_space<vmem>>, vector<1x1x16x16xf32>
    %58 = vector.shape_cast %57 : vector<1x1x16x16xf32> to vector<16x16xf32>
    %59 = vector.shape_cast %56 : vector<16x16xf32> to vector<1x1x16x16xf32>
    tpu.vector_store %arg12[%c0_35, %c0_36, %c0_37, %c0_38], %59 {strides = array<i32>} : memref<1x4x16x16xf32, #tpu.memory_space<vmem>>, vector<1x1x16x16xf32>,
    %60 = vector.extract_strided_slice %33 {offsets = [1, 0, 0], sizes = [1, 16, 16], strides = [1, 1, 1]} : vector<4x16x16xf32> to vector<1x16x16xf32>
    %61 = vector.shape_cast %60 : vector<1x16x16xf32> to vector<16x16xf32>
    %62 = arith.truncf %61 : vector<16x16xf32> to vector<16x16xbf16>
    %63 = vector.extract_strided_slice %37 {offsets = [1, 0, 0], sizes = [1, 16, 16], strides = [1, 1, 1]} : vector<4x16x16xf32> to vector<1x16x16xf32>
    %64 = vector.shape_cast %63 : vector<1x16x16xf32> to vector<16x16xf32>
    %65 = arith.truncf %64 : vector<16x16xf32> to vector<16x16xbf16>
    %cst_39 = arith.constant dense<0.000000e+00> : vector<16x16xf32>
    %66 = tpu.matmul %38, %62, %cst_39 {dimension_numbers = #tpu.dot_dimension_numbers<[1], [0], [0], [1], [0, 0, 1, 1], [], []>} : vector<16x16xbf16>, vector<16x16xbf16>, vector<16x16xf32> -> vector<16x16xf32>
    %cst_40 = arith.constant dense<0.000000e+00> : vector<16x16xf32>
    %67 = tpu.matmul %39, %65, %cst_40 {dimension_numbers = #tpu.dot_dimension_numbers<[1], [0], [0], [1], [0, 0, 1, 1], [], []>} : vector<16x16xbf16>, vector<16x16xbf16>, vector<16x16xf32> -> vector<16x16xf32>
    %68 = arith.subf %66, %67 : vector<16x16xf32>
    %69 = arith.mulf %68, %5 : vector<16x16xf32>
    %c0_41 = arith.constant 0 : index
    %c1 = arith.constant 1 : index
    %c0_42 = arith.constant 0 : index
    %c0_43 = arith.constant 0 : index
    %70 = vector.load %arg11[%c0_41, %c1, %c0_42, %c0_43] : memref<1x4x16x16xf32, #tpu.memory_space<vmem>>, vector<1x1x16x16xf32>
    %71 = vector.shape_cast %70 : vector<1x1x16x16xf32> to vector<16x16xf32>
    %72 = vector.shape_cast %69 : vector<16x16xf32> to vector<1x1x16x16xf32>
    tpu.vector_store %arg11[%c0_41, %c1, %c0_42, %c0_43], %72 {strides = array<i32>} : memref<1x4x16x16xf32, #tpu.memory_space<vmem>>, vector<1x1x16x16xf32>,
    %cst_44 = arith.constant dense<0.000000e+00> : vector<16x16xf32>
    %73 = tpu.matmul %38, %65, %cst_44 {dimension_numbers = #tpu.dot_dimension_numbers<[1], [0], [0], [1], [0, 0, 1, 1], [], []>} : vector<16x16xbf16>, vector<16x16xbf16>, vector<16x16xf32> -> vector<16x16xf32>
    %cst_45 = arith.constant dense<0.000000e+00> : vector<16x16xf32>
    %74 = tpu.matmul %39, %62, %cst_45 {dimension_numbers = #tpu.dot_dimension_numbers<[1], [0], [0], [1], [0, 0, 1, 1], [], []>} : vector<16x16xbf16>, vector<16x16xbf16>, vector<16x16xf32> -> vector<16x16xf32>
    %75 = arith.addf %73, %74 : vector<16x16xf32>
    %76 = arith.mulf %75, %5 : vector<16x16xf32>
    %c0_46 = arith.constant 0 : index
    %c1_47 = arith.constant 1 : index
    %c0_48 = arith.constant 0 : index
    %c0_49 = arith.constant 0 : index
    %77 = vector.load %arg12[%c0_46, %c1_47, %c0_48, %c0_49] : memref<1x4x16x16xf32, #tpu.memory_space<vmem>>, vector<1x1x16x16xf32>
    %78 = vector.shape_cast %77 : vector<1x1x16x16xf32> to vector<16x16xf32>
    %79 = vector.shape_cast %76 : vector<16x16xf32> to vector<1x1x16x16xf32>
    tpu.vector_store %arg12[%c0_46, %c1_47, %c0_48, %c0_49], %79 {strides = array<i32>} : memref<1x4x16x16xf32, #tpu.memory_space<vmem>>, vector<1x1x16x16xf32>,
    %80 = vector.extract_strided_slice %33 {offsets = [2, 0, 0], sizes = [1, 16, 16], strides = [1, 1, 1]} : vector<4x16x16xf32> to vector<1x16x16xf32>
    %81 = vector.shape_cast %80 : vector<1x16x16xf32> to vector<16x16xf32>
    %82 = arith.truncf %81 : vector<16x16xf32> to vector<16x16xbf16>
    %83 = vector.extract_strided_slice %37 {offsets = [2, 0, 0], sizes = [1, 16, 16], strides = [1, 1, 1]} : vector<4x16x16xf32> to vector<1x16x16xf32>
    %84 = vector.shape_cast %83 : vector<1x16x16xf32> to vector<16x16xf32>
    %85 = arith.truncf %84 : vector<16x16xf32> to vector<16x16xbf16>
    %cst_50 = arith.constant dense<0.000000e+00> : vector<16x16xf32>
    %86 = tpu.matmul %38, %82, %cst_50 {dimension_numbers = #tpu.dot_dimension_numbers<[1], [0], [0], [1], [0, 0, 1, 1], [], []>} : vector<16x16xbf16>, vector<16x16xbf16>, vector<16x16xf32> -> vector<16x16xf32>
    %cst_51 = arith.constant dense<0.000000e+00> : vector<16x16xf32>
    %87 = tpu.matmul %39, %85, %cst_51 {dimension_numbers = #tpu.dot_dimension_numbers<[1], [0], [0], [1], [0, 0, 1, 1], [], []>} : vector<16x16xbf16>, vector<16x16xbf16>, vector<16x16xf32> -> vector<16x16xf32>
    %88 = arith.subf %86, %87 : vector<16x16xf32>
    %89 = arith.mulf %88, %5 : vector<16x16xf32>
    %c0_52 = arith.constant 0 : index
    %c2 = arith.constant 2 : index
    %c0_53 = arith.constant 0 : index
    %c0_54 = arith.constant 0 : index
    %90 = vector.load %arg11[%c0_52, %c2, %c0_53, %c0_54] : memref<1x4x16x16xf32, #tpu.memory_space<vmem>>, vector<1x1x16x16xf32>
    %91 = vector.shape_cast %90 : vector<1x1x16x16xf32> to vector<16x16xf32>
    %92 = vector.shape_cast %89 : vector<16x16xf32> to vector<1x1x16x16xf32>
    tpu.vector_store %arg11[%c0_52, %c2, %c0_53, %c0_54], %92 {strides = array<i32>} : memref<1x4x16x16xf32, #tpu.memory_space<vmem>>, vector<1x1x16x16xf32>,
    %cst_55 = arith.constant dense<0.000000e+00> : vector<16x16xf32>
    %93 = tpu.matmul %38, %85, %cst_55 {dimension_numbers = #tpu.dot_dimension_numbers<[1], [0], [0], [1], [0, 0, 1, 1], [], []>} : vector<16x16xbf16>, vector<16x16xbf16>, vector<16x16xf32> -> vector<16x16xf32>
    %cst_56 = arith.constant dense<0.000000e+00> : vector<16x16xf32>
    %94 = tpu.matmul %39, %82, %cst_56 {dimension_numbers = #tpu.dot_dimension_numbers<[1], [0], [0], [1], [0, 0, 1, 1], [], []>} : vector<16x16xbf16>, vector<16x16xbf16>, vector<16x16xf32> -> vector<16x16xf32>
    %95 = arith.addf %93, %94 : vector<16x16xf32>
    %96 = arith.mulf %95, %5 : vector<16x16xf32>
    %c0_57 = arith.constant 0 : index
    %c2_58 = arith.constant 2 : index
    %c0_59 = arith.constant 0 : index
    %c0_60 = arith.constant 0 : index
    %97 = vector.load %arg12[%c0_57, %c2_58, %c0_59, %c0_60] : memref<1x4x16x16xf32, #tpu.memory_space<vmem>>, vector<1x1x16x16xf32>
    %98 = vector.shape_cast %97 : vector<1x1x16x16xf32> to vector<16x16xf32>
    %99 = vector.shape_cast %96 : vector<16x16xf32> to vector<1x1x16x16xf32>
    tpu.vector_store %arg12[%c0_57, %c2_58, %c0_59, %c0_60], %99 {strides = array<i32>} : memref<1x4x16x16xf32, #tpu.memory_space<vmem>>, vector<1x1x16x16xf32>,
    %100 = vector.extract_strided_slice %33 {offsets = [3, 0, 0], sizes = [1, 16, 16], strides = [1, 1, 1]} : vector<4x16x16xf32> to vector<1x16x16xf32>
    %101 = vector.shape_cast %100 : vector<1x16x16xf32> to vector<16x16xf32>
    %102 = arith.truncf %101 : vector<16x16xf32> to vector<16x16xbf16>
    %103 = vector.extract_strided_slice %37 {offsets = [3, 0, 0], sizes = [1, 16, 16], strides = [1, 1, 1]} : vector<4x16x16xf32> to vector<1x16x16xf32>
    %104 = vector.shape_cast %103 : vector<1x16x16xf32> to vector<16x16xf32>
    %105 = arith.truncf %104 : vector<16x16xf32> to vector<16x16xbf16>
    %cst_61 = arith.constant dense<0.000000e+00> : vector<16x16xf32>
    %106 = tpu.matmul %38, %102, %cst_61 {dimension_numbers = #tpu.dot_dimension_numbers<[1], [0], [0], [1], [0, 0, 1, 1], [], []>} : vector<16x16xbf16>, vector<16x16xbf16>, vector<16x16xf32> -> vector<16x16xf32>
    %cst_62 = arith.constant dense<0.000000e+00> : vector<16x16xf32>
    %107 = tpu.matmul %39, %105, %cst_62 {dimension_numbers = #tpu.dot_dimension_numbers<[1], [0], [0], [1], [0, 0, 1, 1], [], []>} : vector<16x16xbf16>, vector<16x16xbf16>, vector<16x16xf32> -> vector<16x16xf32>
    %108 = arith.subf %106, %107 : vector<16x16xf32>
    %109 = arith.mulf %108, %5 : vector<16x16xf32>
    %c0_63 = arith.constant 0 : index
    %c3 = arith.constant 3 : index
    %c0_64 = arith.constant 0 : index
    %c0_65 = arith.constant 0 : index
    %110 = vector.load %arg11[%c0_63, %c3, %c0_64, %c0_65] : memref<1x4x16x16xf32, #tpu.memory_space<vmem>>, vector<1x1x16x16xf32>
    %111 = vector.shape_cast %110 : vector<1x1x16x16xf32> to vector<16x16xf32>
    %112 = vector.shape_cast %109 : vector<16x16xf32> to vector<1x1x16x16xf32>
    tpu.vector_store %arg11[%c0_63, %c3, %c0_64, %c0_65], %112 {strides = array<i32>} : memref<1x4x16x16xf32, #tpu.memory_space<vmem>>, vector<1x1x16x16xf32>,
    %cst_66 = arith.constant dense<0.000000e+00> : vector<16x16xf32>
    %113 = tpu.matmul %38, %105, %cst_66 {dimension_numbers = #tpu.dot_dimension_numbers<[1], [0], [0], [1], [0, 0, 1, 1], [], []>} : vector<16x16xbf16>, vector<16x16xbf16>, vector<16x16xf32> -> vector<16x16xf32>
    %cst_67 = arith.constant dense<0.000000e+00> : vector<16x16xf32>
    %114 = tpu.matmul %39, %102, %cst_67 {dimension_numbers = #tpu.dot_dimension_numbers<[1], [0], [0], [1], [0, 0, 1, 1], [], []>} : vector<16x16xbf16>, vector<16x16xbf16>, vector<16x16xf32> -> vector<16x16xf32>
    %115 = arith.addf %113, %114 : vector<16x16xf32>
    %116 = arith.mulf %115, %5 : vector<16x16xf32>
    %c0_68 = arith.constant 0 : index
    %c3_69 = arith.constant 3 : index
    %c0_70 = arith.constant 0 : index
    %c0_71 = arith.constant 0 : index
    %117 = vector.load %arg12[%c0_68, %c3_69, %c0_70, %c0_71] : memref<1x4x16x16xf32, #tpu.memory_space<vmem>>, vector<1x1x16x16xf32>
    %118 = vector.shape_cast %117 : vector<1x1x16x16xf32> to vector<16x16xf32>
    %119 = vector.shape_cast %116 : vector<16x16xf32> to vector<1x1x16x16xf32>
    tpu.vector_store %arg12[%c0_68, %c3_69, %c0_70, %c0_71], %119 {strides = array<i32>} : memref<1x4x16x16xf32, #tpu.memory_space<vmem>>, vector<1x1x16x16xf32>,
    return
  }
  func.func @transform_0(%arg0: i32, %arg1: i32) -> (i32, i32, i32) {
    %c0_i32 = arith.constant 0 : i32
    %c0_i32_0 = arith.constant 0 : i32
    %c0_i32_1 = arith.constant 0 : i32
    return %arg0, %c0_i32, %c0_i32_0 : i32, i32, i32
  }
  func.func @transform_1(%arg0: i32, %arg1: i32) -> (i32, i32, i32) {
    %c0_i32 = arith.constant 0 : i32
    %c0_i32_0 = arith.constant 0 : i32
    %c0_i32_1 = arith.constant 0 : i32
    return %arg0, %c0_i32, %c0_i32_0 : i32, i32, i32
  }
  func.func @transform_2(%arg0: i32, %arg1: i32) -> (i32, i32, i32, i32) {
    %c0_i32 = arith.constant 0 : i32
    %c0_i32_0 = arith.constant 0 : i32
    %c0_i32_1 = arith.constant 0 : i32
    return %arg0, %arg1, %c0_i32, %c0_i32_0 : i32, i32, i32, i32
  }
  func.func @transform_3(%arg0: i32, %arg1: i32) -> (i32, i32, i32, i32) {
    %c0_i32 = arith.constant 0 : i32
    %c0_i32_0 = arith.constant 0 : i32
    %c0_i32_1 = arith.constant 0 : i32
    return %arg0, %arg1, %c0_i32, %c0_i32_0 : i32, i32, i32, i32
  }
  func.func @transform_4(%arg0: i32, %arg1: i32) -> (i32, i32, i32) {
    %c0_i32 = arith.constant 0 : i32
    %c0_i32_0 = arith.constant 0 : i32
    %c0_i32_1 = arith.constant 0 : i32
    return %arg0, %c0_i32, %c0_i32_0 : i32, i32, i32
  }
  func.func @transform_5(%arg0: i32, %arg1: i32) -> (i32, i32) {
    %c0_i32 = arith.constant 0 : i32
    %c0_i32_0 = arith.constant 0 : i32
    %c0_i32_1 = arith.constant 0 : i32
    return %c0_i32, %c0_i32_0 : i32, i32
  }
  func.func @transform_6(%arg0: i32, %arg1: i32) -> (i32, i32) {
    %c0_i32 = arith.constant 0 : i32
    %c0_i32_0 = arith.constant 0 : i32
    %c0_i32_1 = arith.constant 0 : i32
    return %c0_i32, %c0_i32_0 : i32, i32
  }
  func.func @transform_7(%arg0: i32, %arg1: i32) -> (i32, i32) {
    %c0_i32 = arith.constant 0 : i32
    %c0_i32_0 = arith.constant 0 : i32
    %c0_i32_1 = arith.constant 0 : i32
    return %c0_i32, %c0_i32_0 : i32, i32
  }
  func.func @transform_8(%arg0: i32, %arg1: i32) -> (i32, i32) {
    %c0_i32 = arith.constant 0 : i32
    %c0_i32_0 = arith.constant 0 : i32
    %c0_i32_1 = arith.constant 0 : i32
    return %c0_i32, %c0_i32_0 : i32, i32
  }
  func.func @transform_9(%arg0: i32, %arg1: i32) -> (i32, i32, i32, i32) {
    %c0_i32 = arith.constant 0 : i32
    %c0_i32_0 = arith.constant 0 : i32
    %c0_i32_1 = arith.constant 0 : i32
    return %arg0, %arg1, %c0_i32, %c0_i32_0 : i32, i32, i32, i32
  }
  func.func @transform_10(%arg0: i32, %arg1: i32) -> (i32, i32, i32, i32) {
    %c0_i32 = arith.constant 0 : i32
    %c0_i32_0 = arith.constant 0 : i32
    %c0_i32_1 = arith.constant 0 : i32
    return %arg0, %arg1, %c0_i32, %c0_i32_0 : i32, i32, i32, i32
  }
}

</mosaic_0001>

<bundles_post_ra>
// kernel: tpu_custom_call.1
= control target key start
LH: loop header
LB: loop body
LE: loop exit
PB: predicated region body
PF: predicated region fallthrough
CT: control target
= control target key end

     0   :  { %6 = vsyncpa [#allocation3], 0  ;;  %s341_s0 = inlined_call_operand.hbm [shape: f32[8,128], index: 0, kind: input, shape index: {}]   ;;  %s342_s1 = inlined_call_operand.hbm [shape: f32[8,128], index: 1, kind: output, shape index: {}]  }
   0x1   :  { %7 = vsyncpa [#allocation4], 0  ;;  %s262_s6 = smov 0  }
   0x2 LB: > { %s145_s7 = sadd.s32 4294967295, %s248_s6   ;;  %p146_p0 = scmp.ge.s32.totalorder %s248_s6, 1  ;;  %s248_s6 = sphi %s262_s6, %s13_s6  }
   0x3   : > { %p60_p1 = scmp.lt.s32.totalorder %s248_s6, 3  ;;  %p276_p3 = scmp.eq.s32.totalorder %s145_s7, 0 }
   0x4   : > { %s250_s10 = smov [#allocation2]   ;;  %s180_s15 = scalar_lea.hbm %s341_s0, 128 }
   0x5   : > { %p270_p2 = pnand %p146_p0, %p60_p1  ;;  %s73_s11 = sshll.u32 %s250_s10, 4  ;;  %s74_s11 = int_to_ptr.vmem [resolvable:$true] %s73_s11 }
   0x6   : > { %s347_s9 = scalar_select %p276_p3, 1, 0 }
   0x7   : > { %s346_s8 = scalar_select %p270_p2, 1, 0 }
   0x8   : > { %p162_p4 = pneg %p270_p2  ;;  %p181_p6 = scmp.ne.s32.totalorder %s341_s0, %s180_s15 }
   0x9   : > { %p187_p10 = scmp.lt.u32.totalorder %s180_s15, %s341_s0 }
   0xa   : > { %p284_p5 = pnand %p276_p3, %p162_p4 }
   0xc   : > { %p182_p7 = pneg %p284_p5 }
   0xe   : > { %p183_p8 = pnand %p182_p7, %p181_p6 }
  0x10   : > { %p184_p9 = pneg %p183_p8 }
  0x12   : > { %p189_p11 = pnand %p187_p10, %p184_p9 }
  0x14   : > { %192 = shalt.err (!%p189_p11)
}
  0x15   : > { %s193_s20 = scalar_lea.vmem %s74_s11, 128  ;;  %p201_p1 = scmp.lt.s32.totalorder %s74_s11, %s74_s11 }
  0x16   : > { %p194_p12 = scmp.ne.s32.totalorder %s74_s11, %s193_s20  ;;  %p202_p4 = scmp.lt.s32.totalorder %s193_s20, %s193_s20 }
  0x18   : > { %p196_p13 = pnand %p194_p12, %p182_p7  ;;  %p203_p3 = por %p202_p4, %p201_p1 }
  0x1a   : > { %p197_p0 = pneg %p196_p13 }
  0x1c   : > { %p204_p2 = pnand %p203_p3, %p197_p0 }
  0x1e   : > { %207 = shalt.err (!%p204_p2)
}
  0x1f   : > { %165 = dma.hbm_to_vmem [thread:$0]  (!%p284_p5), %s341_s0, 128, %s74_s11, [#allocation3]  }
  0x20   : > { %p349_p6 = scmp.ne.s32.totalorder %s346_s8, 0 }
  0x21   : > { %p350_p8 = scmp.ne.s32.totalorder (!%p349_p6), %s347_s9, 0 }
  0x22   : > { %86 = sbr.rel (%p349_p6) target bundleno = 67 (0x43), region = 24 }
  0x29   : > { %239 = dma.done.wait (%p350_p8), [#allocation3], 128  }
  0x2a   : > { %241 = vsyncadd (%p350_p8), [#allocation3], 4294967168  ;;  %s251_s23 = smov [#allocation5]   ;;  %v96_v0 = vld [vmem:[#allocation2] sm:$0xff]  ;;  %p312_p2 = scmp.eq.s32.totalorder %s145_s7, 1 }
  0x2b   : > { %s106_s24 = sshll.u32 %s251_s23, 4  ;;  %v97_v1 = vadd.f32 1.0, %v96_v0  ;;  %s107_s24 = int_to_ptr.vmem [resolvable:$true] %s106_s24 }
  0x2c   : > { %s208_s26 = scalar_lea.vmem %s107_s24, 128  ;;  %p215_p9 = scmp.lt.s32.totalorder %s107_s24, %s107_s24 }
  0x2d   : > { %98 = vst [vmem:[#allocation5] sm:$0xff] %v97_v1  ;;  %p209_p3 = scmp.ne.s32.totalorder %s107_s24, %s208_s26  ;;  %p216_p10 = scmp.lt.s32.totalorder %s208_s26, %s208_s26 }
  0x2f   : > { %p210_p5 = pnand %p209_p3, %p312_p2  ;;  %p217_p11 = por %p216_p10, %p215_p9 }
  0x31   : > { %p211_p7 = pneg %p210_p5 }
  0x33   : > { %p218_p12 = pnand %p217_p11, %p211_p7 }
  0x35   : > { %221 = shalt.err (!%p218_p12)
}
  0x36   : > { %s222_s29 = scalar_lea.hbm %s342_s1, 128 }
  0x37   : > { %p223_p13 = scmp.ne.s32.totalorder %s342_s1, %s222_s29  ;;  %p228_p4 = scmp.lt.u32.totalorder %s222_s29, %s342_s1 }
  0x39   : > { %p224_p0 = pnand %p223_p13, %p312_p2 }
  0x3b   : > { %p225_p1 = pneg %p224_p0 }
  0x3d   : > { %p230_p6 = pnand %p228_p4, %p225_p1 }
  0x3f   : > { %233 = shalt.err (!%p230_p6)
}
  0x40   : > { %159 = dma.vmem_to_hbm [thread:$0]  (%p312_p2), %s107_s24, 128, %s342_s1, [#allocation4]  }
  0x41   : > { %243 = dma.done.wait (%p312_p2), [#allocation4], 128  }
  0x42   : > { %245 = vsyncadd (%p312_p2), [#allocation4], 4294967168 }
  0x43 PF: > { %s13_s6 = sadd.s32 1, %s248_s6  }
  0x44   : > { %p10_p8 = scmp.ge.s32.totalorder %s13_s6, 4  }
  0x46   :  { %12 = sbr.rel (!%p10_p8) target bundleno = 2 (0x2), region = 53 }
  0x4d   :  { %119 = vsyncpa [#allocation3], 1 }
  0x4e   :  { %121 = vsyncpa [#allocation3 + $0x1], 1 }
  0x4f   :  { %122 = vsyncpa [#allocation4], 1 }
  0x50   :  { %124 = vsyncpa [#allocation4 + $0x1], 1 }

// kernel: tpu_custom_call.1
= control target key start
LH: loop header
LB: loop body
LE: loop exit
PB: predicated region body
PF: predicated region fallthrough
CT: control target
= control target key end

     0   :  { %s3433_s0 = inlined_call_operand.hbm [shape: f32[2,16,16], index: 0, kind: input, shape index: {}]   ;;  %s3434_s1 = inlined_call_operand.hbm [shape: f32[2,16,16], index: 1, kind: input, shape index: {}]   ;;  %s3435_s2 = inlined_call_operand.hbm [shape: f32[2,4,16,16], index: 2, kind: input, shape index: {}]   ;;  %s3436_s3 = inlined_call_operand.hbm [shape: f32[2,4,16,16], index: 3, kind: input, shape index: {}]   ;;  %s3437_s4 = inlined_call_operand.hbm [shape: f32[2,16,16], index: 4, kind: input, shape index: {}]   ;;  %s3438_s5 = inlined_call_operand.vmem [shape: bf16[16,16], index: 5, kind: input, shape index: {}]   ;;  %s3439_s6 = inlined_call_operand.vmem [shape: bf16[16,16], index: 6, kind: input, shape index: {}]   ;;  %s3440_s7 = inlined_call_operand.vmem [shape: bf16[16,16], index: 7, kind: input, shape index: {}]   ;;  %s3441_s8 = inlined_call_operand.hbm [shape: bf16[16,16], index: 8, kind: input, shape index: {}]   ;;  %s3442_s9 = inlined_call_operand.hbm [shape: f32[2,4,16,16], index: 9, kind: output, shape index: {0}]   ;;  %s3443_s10 = inlined_call_operand.hbm [shape: f32[2,4,16,16], index: 10, kind: output, shape index: {1}]  }
   0x1   :  { %3474 = sst [smem:[#allocation33_spill]] %s3434_s1 }
   0x2   :  { %3475 = sst [smem:[#allocation34_spill]] %s3436_s3 }
   0x3   :  { %3476 = sst [smem:[#allocation35_spill]] %s3438_s5 }
   0x4   :  { %3477 = sst [smem:[#allocation36_spill]] %s3439_s6 }
   0x5   :  { %3478 = sst [smem:[#allocation37_spill]] %s3440_s7 }
   0x6   :  { %3479 = sst [smem:[#allocation38_spill]] %s3442_s9 }
   0x7   :  { %3480 = sst [smem:[#allocation39_spill]] %s3443_s10 }
   0x8   :  { %16 = vsyncpa [#allocation3], 0 }
   0x9   :  { %18 = vsyncpa [#allocation3 + $0x1], 0 }
   0xa   :  { %19 = vsyncpa [#allocation6], 0 }
   0xb   :  { %21 = vsyncpa [#allocation6 + $0x1], 0 }
   0xc   :  { %22 = vsyncpa [#allocation9], 0 }
   0xd   :  { %24 = vsyncpa [#allocation9 + $0x1], 0 }
   0xe   :  { %25 = vsyncpa [#allocation12], 0 }
   0xf   :  { %26 = vsyncpa [#allocation4], 0 }
  0x10   :  { %28 = vsyncpa [#allocation4 + $0x1], 0 }
  0x11   :  { %29 = vsyncpa [#allocation15], 0 }
  0x12   :  { %31 = vsyncpa [#allocation15 + $0x1], 0  ;;  %s2761_s13 = smov 0   ;;  %s2763_s14 = smov 0  }
  0x13   :  { %s2765_s15 = smov 0   ;;  %s2767_s16 = smov 0  }
  0x14   :  { %s2769_s17 = smov 0   ;;  %s2771_s18 = smov 0  }
  0x15 LB: > { %3481 = sst [smem:[#allocation22_spill]] %s2668_s13  ;;  %s49_s19 = sadd.s32 1, %s2684_s17  ;;  %s2688_s18 = sphi %s2771_s18, %s37_s18   ;;  %s2684_s17 = sphi %s2769_s17, %s3531_s17   ;;  %s2680_s16 = sphi %s2767_s16, %s3530_s16   ;;  %s2676_s15 = sphi %s2765_s15, %s3529_s15   ;;  %s2672_s14 = sphi %s2763_s14, %s3533_s14   ;;  %s2668_s13 = sphi %s2761_s13, %s3532_s13  }
  0x16   : > { %3482 = sst [smem:[#allocation23_spill]] %s2676_s15  ;;  %s56_s20 = sadd.s32 1, %s2676_s15 }
  0x17   : > { %3483 = sst [smem:[#allocation24_spill]] %s2680_s16  ;;  %p51_p0 = scmp.ge.s32.totalorder %s49_s19, 2 }
  0x18   : > { %3484 = sst [smem:[#allocation25_spill]] %s2684_s17  ;;  %p3447_p1 = scmp.ne.s32.totalorder %s2676_s15, %s2672_s14 }
  0x19   : > { %3485 = sst [smem:[#allocation26_spill]] %s2688_s18  ;;  %p64_p2 = scmp.eq.s32.totalorder %s2688_s18, 0 }
  0x1a   : > { %s3535_s19 = smov (%p51_p0, %s49_s19), 0  ;;  %p2320_p5 = scmp.lt.s32.totalorder %s2688_s18, 2 }
  0x1b   : > { %3486 = sst [smem:[#allocation27_spill]] %s3535_s19  ;;  %p65_p4 = por %p64_p2, %p3447_p1 }
  0x1c   : > { %s53_s21 = ssub.s32 %s2684_s17, %s3535_s19  ;;  %s2806_s22 = sand.u32 1, %s2676_s15  }
  0x1d   : > { %p54_p6 = scmp.eq.s32.totalorder %s53_s21, 0  ;;  %s2809_s23 = sshll.u32 %s2806_s22, 4 }
  0x1e   : > { %s2812_s24 = sshll.u32 %s2684_s17, 8  ;;  %p2814_p7 = pnand %p2320_p5, %p65_p4 }
  0x1f   : > { %s2819_s26 = scalar_select %p54_p6, %s2676_s15, %s56_s20  }
  0x20   : > { %s3487_s25 = scalar_select %p2814_p7, 1, 0 }
  0x21   : > { %3488 = sst [smem:[#allocation28_spill]] %s2819_s26  ;;  %s3446_s27 = sand.u32 1, %s2688_s18  }
  0x22   : > { %s3489_s1 = sld [smem:[#allocation33_spill]]  ;;  %s388_s11 = scalar_lea.vmem [#allocation5], %s2809_s23 }
  0x23   : > { %s395_s12 = sshll.u32 %s388_s11, 4  ;;  %s2834_s19 = scalar_lea.sflag [#allocation6], %s3446_s27  ;;  %s2829_s12 = int_to_ptr.vmem [resolvable:$true] %s395_s12 }
  0x24   : > { %p2840_p9 = pneg %p2814_p7 }
  0x26   : > { %s3490_s26 = scalar_select %p2840_p9, 1, 0 }
  0x28   : > { %s2826_s30 = scalar_lea.hbm %s3489_s1, %s2812_s24  ;;  %s2389_s11 = scalar_lea.hbm %s3489_s1, 512 }
  0x29   : > { %s2384_s20 = scalar_lea.hbm %s2826_s30, 256  ;;  %p2390_p12 = scmp.lt.u32.totalorder %s2826_s30, %s3489_s1 }
  0x2a   : > { %p2385_p8 = scmp.ne.s32.totalorder %s2826_s30, %s2384_s20  ;;  %p2391_p13 = scmp.lt.u32.totalorder %s2389_s11, %s2384_s20 }
  0x2b   : > { %p2393_p2 = scmp.lt.u32.totalorder %s2384_s20, %s2826_s30 }
  0x2c   : > { %p2387_p10 = pnand %p2840_p9, %p2385_p8  ;;  %p2392_p0 = por %p2391_p13, %p2390_p12 }
  0x2e   : > { %p2388_p11 = pneg %p2387_p10  ;;  %p2394_p4 = por %p2393_p2, %p2392_p0 }
  0x30   : > { %p2395_p5 = pnand %p2394_p4, %p2388_p11 }
  0x32   : > { %2398 = shalt.err (!%p2395_p5)
}
  0x33   : > { %s2399_s27 = scalar_lea.vmem %s2829_s12, 256  ;;  %s2690_s28 = smov [#allocation5]  }
  0x34   : > { %p2400_p6 = scmp.ne.s32.totalorder %s2829_s12, %s2399_s27  ;;  %s2404_s29 = sshll.u32 %s2690_s28, 4  ;;  %s2405_s29 = int_to_ptr.vmem [resolvable:$false] %s2404_s29 }
  0x35   : > { %s2406_s9 = scalar_lea.vmem %s2405_s29, 512  ;;  %p2407_p3 = scmp.lt.s32.totalorder %s2829_s12, %s2405_s29 }
  0x36   : > { %p2402_p8 = pnand %p2400_p6, %p2840_p9  ;;  %p2408_p1 = scmp.lt.s32.totalorder %s2406_s9, %s2399_s27 }
  0x38   : > { %p2403_p10 = pneg %p2402_p8  ;;  %p2409_p12 = por %p2408_p1, %p2407_p3 }
  0x3a   : > { %p2410_p13 = pnand %p2409_p12, %p2403_p10 }
  0x3c   : > { %2413 = shalt.err (!%p2410_p13)
}
  0x3d   : > { %s3450_s21 = smov 128   ;;  %s3452_s20 = smov 8  }
  0x3e   : > { %2302 = dma.hbm_to_vmem [thread:$0]  (!%p2814_p7), %s2826_s30, 256, %s2829_s12, %s2834_s19, %s3450_s21, %s3450_s21, %s3452_s20  }
  0x3f   : > { %s2055_s27 = sshll.u32 %s2684_s17, 10  ;;  %s3491_s9 = sshll.u32 %s2806_s22, 6 }
  0x40   : > { %s2871_s29 = scalar_lea.hbm %s3435_s2, %s2055_s27  ;;  %s409_s1 = scalar_lea.vmem [#allocation7], %s3491_s9 }
  0x41   : > { %s419_s10 = sshll.u32 %s409_s1, 4  ;;  %s3492_s3 = sld [smem:[#allocation34_spill]]  ;;  %s2875_s10 = int_to_ptr.vmem [resolvable:$true] %s419_s10 }
  0x42   : > { %s3493_s7 = smov %s3491_s9  ;;  %s3494_s11 = sand.u32 1, %s2688_s18  }
  0x43   : > { %s433_s30 = scalar_lea.vmem [#allocation8], %s3493_s7  ;;  %s2888_s28 = scalar_lea.sflag [#allocation9], %s3494_s11 }
  0x44   : > { %s443_s12 = sshll.u32 %s433_s30, 4  ;;  %s2884_s12 = int_to_ptr.vmem [resolvable:$true] %s443_s12 }
  0x47   : > { %s2880_s5 = scalar_lea.hbm %s3492_s3, %s2055_s27  ;;  %s2419_s27 = scalar_lea.hbm %s3492_s3, 2048 }
  0x48   : > { %s2414_s1 = scalar_lea.hbm %s2880_s5, 1024  ;;  %p2420_p0 = scmp.lt.u32.totalorder %s2880_s5, %s3492_s3 }
  0x49   : > { %p2415_p1 = scmp.ne.s32.totalorder %s2880_s5, %s2414_s1  ;;  %p2421_p2 = scmp.lt.u32.totalorder %s2419_s27, %s2414_s1 }
  0x4a   : > { %p2423_p5 = scmp.lt.u32.totalorder %s2414_s1, %s2880_s5 }
  0x4b   : > { %p2417_p3 = pnand %p2415_p1, %p2840_p9  ;;  %p2422_p4 = por %p2421_p2, %p2420_p0 }
  0x4d   : > { %p2418_p11 = pneg %p2417_p3  ;;  %p2424_p6 = por %p2423_p5, %p2422_p4 }
  0x4f   : > { %p2425_p8 = pnand %p2424_p6, %p2418_p11 }
  0x51   : > { %2428 = shalt.err (!%p2425_p8)
}
  0x52   : > { %s2429_s7 = scalar_lea.vmem %s2884_s12, 1024  ;;  %s2693_s30 = smov [#allocation8]  }
  0x53   : > { %p2430_p10 = scmp.ne.s32.totalorder %s2884_s12, %s2429_s7  ;;  %s2434_s11 = sshll.u32 %s2693_s30, 4  ;;  %s2435_s11 = int_to_ptr.vmem [resolvable:$false] %s2434_s11 }
  0x54   : > { %s2436_s21 = scalar_lea.vmem %s2435_s11, 2048  ;;  %p2437_p1 = scmp.lt.s32.totalorder %s2884_s12, %s2435_s11 }
  0x55   : > { %p2432_p12 = pnand %p2430_p10, %p2840_p9  ;;  %p2438_p3 = scmp.lt.s32.totalorder %s2436_s21, %s2429_s7 }
  0x57   : > { %p2433_p13 = pneg %p2432_p12  ;;  %p2439_p0 = por %p2438_p3, %p2437_p1 }
  0x59   : > { %p2440_p2 = pnand %p2439_p0, %p2433_p13 }
  0x5b   : > { %2443 = shalt.err (!%p2440_p2)
}
  0x5c   : > { %s3495_s1 = smov 128   ;;  %s2916_s6 = sadd.s32 4294967295, %s2688_s18  }
  0x5d   : > { %2308 = dma.hbm_to_vmem [thread:$0]  (!%p2814_p7), %s2880_s5, 1024, %s2884_s12, %s2888_s28, %s3495_s1, %s3495_s1, %s3452_s20  }
  0x5e   : > { %3496 = sst [smem:[#allocation29_spill]] %s2916_s6  ;;  %s1969_s16 = sadd.s32 4294967294, %s2688_s18  }
  0x5f   : > { %p69_p11 = scmp.ne.s32.totalorder %s2672_s14, %s2668_s13  ;;  %p3464_p4 = scmp.eq.s32.totalorder %s2916_s6, 0 }
  0x60   : > { %p287_p5 = scmp.eq.s32.totalorder %s2916_s6, 1  ;;  %p293_p6 = scmp.eq.s32.totalorder %s1969_s16, 1 }
  0x61   : > { %p2925_p8 = por %p3464_p4, %p69_p11  ;;  %p1970_p10 = scmp.ge.s32.totalorder %s2688_s18, 1 }
  0x62   : > { %p3499_p12 = scmp.ne.s32.totalorder %s2676_s15, %s2672_s14  ;;  %p2937_p1 = por %p293_p6, %p69_p11 }
  0x63   : > { %s3497_s27 = scalar_select %p2925_p8, 1, 0 }
  0x64   : > { %p2933_p13 = por %p287_p5, %p3499_p12  ;;  %p328_p3 = scmp.lt.s32.totalorder %s2688_s18, 3 }
  0x65   : > { %3498 = sst [smem:[#allocation30_spill]] %s3497_s27  ;;  %s2694_s7 = smov [#allocation11]  }
  0x66   : > { %s3500_s5 = scalar_select %p2933_p13, 1, 0 }
  0x67   : > { %s3502_s12 = scalar_select %p2937_p1, 1, 0 }
  0x68   : > { %3501 = sst [smem:[#allocation31_spill]] %s3500_s5  ;;  %p2942_p0 = pnand %p1970_p10, %p328_p3 }
  0x69   : > { %3503 = sst [smem:[#allocation32_spill]] %s3502_s12  ;;  %s349_s30 = sshll.u32 %s2694_s7, 4  ;;  %s2946_s30 = int_to_ptr.vmem [resolvable:$true] %s349_s30 }
  0x6a   : > { %s3504_s9 = scalar_select %p2942_p0, 1, 0 }
  0x6b   : > { %p2292_p2 = pneg %p2942_p0  ;;  %s2954_s16 = scalar_lea.hbm %s3433_s0, %s2812_s24 }
  0x6c   : > { %s367_s3 = scalar_lea.vmem [#allocation2], %s2809_s23  ;;  %s2969_s18 = scalar_lea.hbm %s3437_s4, %s2812_s24 }
  0x6d   : > { %p2958_p11 = pnand %p2292_p2, %p3464_p4  ;;  %s374_s17 = sshll.u32 %s367_s3, 4  ;;  %s2963_s17 = int_to_ptr.vmem [resolvable:$true] %s374_s17 }
  0x6e   : > { %s2444_s11 = scalar_lea.hbm %s3441_s8, 128 }
  0x6f   : > { %p2445_p5 = scmp.ne.s32.totalorder %s3441_s8, %s2444_s11  ;;  %p2446_p6 = pneg %p2958_p11 }
  0x70   : > { %p2451_p3 = scmp.lt.u32.totalorder %s2444_s11, %s3441_s8 }
  0x71   : > { %p2447_p10 = pnand %p2446_p6, %p2445_p5 }
  0x73   : > { %p2448_p12 = pneg %p2447_p10 }
  0x75   : > { %p2453_p2 = pnand %p2451_p3, %p2448_p12 }
  0x77   : > { %2456 = shalt.err (!%p2453_p2)
}
  0x78   : > { %s2457_s15 = scalar_lea.vmem %s2946_s30, 128  ;;  %p2465_p8 = scmp.lt.s32.totalorder %s2946_s30, %s2946_s30 }
  0x79   : > { %p2458_p4 = scmp.ne.s32.totalorder %s2946_s30, %s2457_s15  ;;  %p2466_p0 = scmp.lt.s32.totalorder %s2457_s15, %s2457_s15 }
  0x7b   : > { %p2460_p1 = pnand %p2458_p4, %p2446_p6  ;;  %p2467_p7 = por %p2466_p0, %p2465_p8 }
  0x7d   : > { %p2461_p13 = pneg %p2460_p1 }
  0x7f   : > { %p2468_p9 = pnand %p2467_p7, %p2461_p13 }
  0x81   : > { %2471 = shalt.err (!%p2468_p9)
}
  0x82   : > { %s2695_s13 = smov 64   ;;  %s2696_s24 = smov 4  }
  0x83   : > { %2295 = dma.hbm_to_vmem [thread:$0]  (!%p2958_p11), %s3441_s8, 128, %s2946_s30, [#allocation12], %s2695_s13, %s2695_s13, %s2696_s24  }
  0x84   : > { %s364_s12 = scalar_lea.sflag [#allocation3], %s2806_s22  ;;  %s2472_s7 = scalar_lea.hbm %s2954_s16, 256 }
  0x85   : > { %p2473_p4 = scmp.ne.s32.totalorder %s2954_s16, %s2472_s7  ;;  %p3506_p7 = scmp.ne.s32.totalorder %s3490_s26, 0 }
  0x86   : > { %s2477_s3 = scalar_lea.hbm %s3433_s0, 512  ;;  %p2478_p13 = scmp.lt.u32.totalorder %s2954_s16, %s3433_s0 }
  0x87   : > { %p2475_p9 = pnand %p2473_p4, %p3506_p7  ;;  %p2479_p1 = scmp.lt.u32.totalorder %s2477_s3, %s2472_s7 }
  0x88   : > { %p2481_p5 = scmp.lt.u32.totalorder %s2472_s7, %s2954_s16 }
  0x89   : > { %p2476_p8 = pneg %p2475_p9  ;;  %p2480_p0 = por %p2479_p1, %p2478_p13 }
  0x8b   : > { %p2482_p6 = por %p2481_p5, %p2480_p0 }
  0x8d   : > { %p2483_p10 = pnand %p2482_p6, %p2476_p8 }
  0x8f   : > { %2486 = shalt.err (!%p2483_p10)
}
  0x90   : > { %s2487_s20 = scalar_lea.vmem %s2963_s17, 256  ;;  %s2697_s30 = smov [#allocation2]  }
  0x91   : > { %p2488_p11 = scmp.ne.s32.totalorder %s2963_s17, %s2487_s20  ;;  %s2492_s13 = sshll.u32 %s2697_s30, 4  ;;  %s2493_s13 = int_to_ptr.vmem [resolvable:$false] %s2492_s13 }
  0x92   : > { %s2494_s27 = scalar_lea.vmem %s2493_s13, 512  ;;  %p2495_p2 = scmp.lt.s32.totalorder %s2963_s17, %s2493_s13 }
  0x93   : > { %p2490_p12 = pnand %p2488_p11, %p3506_p7  ;;  %p2496_p4 = scmp.lt.s32.totalorder %s2494_s27, %s2487_s20 }
  0x95   : > { %p2491_p3 = pneg %p2490_p12  ;;  %p2497_p9 = por %p2496_p4, %p2495_p2 }
  0x97   : > { %p2498_p13 = pnand %p2497_p9, %p2491_p3 }
  0x99   : > { %2501 = shalt.err (!%p2498_p13)
}
  0x9a   : > { %p3507_p8 = scmp.ne.s32.totalorder %s3487_s25, 0  ;;  %s3508_s24 = smov 8  }
  0x9b   : > { %s2502_s6 = scalar_lea.hbm %s2871_s29, 1024  ;;  %s2507_s11 = scalar_lea.hbm %s3435_s2, 2048 }
  0x9c   : > { %2299 = dma.hbm_to_vmem [thread:$0]  (!%p3507_p8), %s2954_s16, 256, %s2963_s17, %s364_s12, %s3495_s1, %s3495_s1, %s3508_s24  }
  0x9d   : > { %p2503_p1 = scmp.ne.s32.totalorder %s2871_s29, %s2502_s6  ;;  %p2508_p6 = scmp.lt.u32.totalorder %s2871_s29, %s3435_s2 }
  0x9e   : > { %p2509_p10 = scmp.lt.u32.totalorder %s2507_s11, %s2502_s6  ;;  %p2511_p12 = scmp.lt.u32.totalorder %s2502_s6, %s2871_s29 }
  0x9f   : > { %p2505_p0 = pnand %p2503_p1, %p3506_p7 }
  0xa0   : > { %p2510_p11 = por %p2509_p10, %p2508_p6 }
  0xa1   : > { %p2506_p5 = pneg %p2505_p0 }
  0xa2   : > { %p2512_p3 = por %p2511_p12, %p2510_p11 }
  0xa4   : > { %p2513_p2 = pnand %p2512_p3, %p2506_p5 }
  0xa6   : > { %2516 = shalt.err (!%p2513_p2)
}
  0xa7   : > { %s2517_s17 = scalar_lea.vmem %s2875_s10, 1024  ;;  %s2698_s22 = smov [#allocation7]  }
  0xa8   : > { %p2518_p4 = scmp.ne.s32.totalorder %s2875_s10, %s2517_s17  ;;  %s2522_s16 = sshll.u32 %s2698_s22, 4  ;;  %s2523_s16 = int_to_ptr.vmem [resolvable:$false] %s2522_s16 }
  0xa9   : > { %s2524_s12 = scalar_lea.vmem %s2523_s16, 2048  ;;  %p2525_p1 = scmp.lt.s32.totalorder %s2875_s10, %s2523_s16 }
  0xaa   : > { %p2520_p9 = pnand %p2518_p4, %p3506_p7  ;;  %p2526_p0 = scmp.lt.s32.totalorder %s2524_s12, %s2517_s17 }
  0xac   : > { %p2521_p13 = pneg %p2520_p9  ;;  %p2527_p6 = por %p2526_p0, %p2525_p1 }
  0xae   : > { %p2528_p10 = pnand %p2527_p6, %p2521_p13 }
  0xb0   : > { %2531 = shalt.err (!%p2528_p10)
}
  0xb1   : > { %2305 = dma.hbm_to_vmem [thread:$0]  (!%p3507_p8), %s2871_s29, 1024, %s2875_s10, %s2834_s19, %s3495_s1, %s3495_s1, %s3508_s24  }
  0xb2   : > { %s457_s15 = scalar_lea.vmem [#allocation10], %s2809_s23  ;;  %s2532_s30 = scalar_lea.hbm %s2969_s18, 256 }
  0xb3   : > { %s464_s20 = sshll.u32 %s457_s15, 4  ;;  %p2533_p5 = scmp.ne.s32.totalorder %s2969_s18, %s2532_s30  ;;  %s3045_s20 = int_to_ptr.vmem [resolvable:$true] %s464_s20 }
  0xb4   : > { %s2537_s6 = scalar_lea.hbm %s3437_s4, 512  ;;  %p2538_p3 = scmp.lt.u32.totalorder %s2969_s18, %s3437_s4 }
  0xb5   : > { %p2535_p11 = pnand %p2533_p5, %p3506_p7  ;;  %p2539_p2 = scmp.lt.u32.totalorder %s2537_s6, %s2532_s30 }
  0xb6   : > { %p2541_p9 = scmp.lt.u32.totalorder %s2532_s30, %s2969_s18 }
  0xb7   : > { %p2536_p12 = pneg %p2535_p11  ;;  %p2540_p4 = por %p2539_p2, %p2538_p3 }
  0xb9   : > { %p2542_p13 = por %p2541_p9, %p2540_p4 }
  0xbb   : > { %p2543_p1 = pnand %p2542_p13, %p2536_p12 }
  0xbd   : > { %2546 = shalt.err (!%p2543_p1)
}
  0xbe   : > { %s2547_s10 = scalar_lea.vmem %s3045_s20, 256  ;;  %s2699_s19 = smov [#allocation10]  }
  0xbf   : > { %p2548_p0 = scmp.ne.s32.totalorder %s3045_s20, %s2547_s10  ;;  %s2552_s23 = sshll.u32 %s2699_s19, 4  ;;  %s2553_s23 = int_to_ptr.vmem [resolvable:$false] %s2552_s23 }
  0xc0   : > { %s2554_s29 = scalar_lea.vmem %s2553_s23, 512  ;;  %p2555_p5 = scmp.lt.s32.totalorder %s3045_s20, %s2553_s23 }
  0xc1   : > { %p2550_p6 = pnand %p2548_p0, %p3506_p7  ;;  %p2556_p11 = scmp.lt.s32.totalorder %s2554_s29, %s2547_s10 }
  0xc3   : > { %p2551_p10 = pneg %p2550_p6  ;;  %p2557_p3 = por %p2556_p11, %p2555_p5 }
  0xc5   : > { %p2558_p2 = pnand %p2557_p3, %p2551_p10 }
  0xc7   : > { %2561 = shalt.err (!%p2558_p2)
}
  0xc8   : > { %2311 = dma.hbm_to_vmem [thread:$0]  (!%p3507_p8), %s2969_s18, 256, %s3045_s20, %s2888_s28, %s3495_s1, %s3495_s1, %s3508_s24  }
  0xc9   : > { %p3509_p7 = scmp.ne.s32.totalorder %s3504_s9, 0 }
  0xca   : > { %s3510_s26 = sld [smem:[#allocation30_spill]] (!%p3509_p7)  ;;  %s3075_s11 = sand.u32 (!%p3509_p7), 1, %s2672_s14  }
  0xcb   : > { %476 = sbr.rel (%p3509_p7) target bundleno = 789 (0x315), region = 56  ;;  %s3078_s21 = sshll.u32 (!%p3509_p7), %s3075_s11, 4 }
  0xcc   : > { %s479_s25 = scalar_lea.sflag (!%p3509_p7), [#allocation3], %s3075_s11  ;;  %s482_s3 = scalar_lea.vmem (!%p3509_p7), [#allocation2], %s3078_s21 }
  0xd0   : > { %p3511_p12 = scmp.ne.s32.totalorder (!%p3509_p7), %s3510_s26, 0 }
  0xd2   : > { %2643 = dma.done.wait (%p3511_p12), %s479_s25, 256  }
  0xd3   : > { %2645 = vsyncadd (%p3511_p12), %s479_s25, 4294967040  ;;  %s3512_s18 = sld [smem:[#allocation29_spill]]  ;;  %s491_s9 = scalar_lea.vmem [#allocation5], %s3078_s21 }
  0xd9   : > { %s487_s28 = sand.u32 1, %s3512_s18  }
  0xda   : > { %s488_s1 = scalar_lea.sflag [#allocation6], %s487_s28 }
  0xdb   : > { %2647 = dma.done.wait (%p3511_p12), %s488_s1, 1280  }
  0xdc   : > { %2649 = vsyncadd (%p3511_p12), %s488_s1, 4294966016  ;;  %s3093_s24 = sshll.u32 %s3075_s11, 6  ;;  %s506_s22 = scalar_lea.sflag [#allocation9], %s487_s28 }
  0xdd   : > { %s3096_s17 = scalar_lea.vmem [#allocation7], %s3093_s24  ;;  %s3099_s16 = scalar_lea.vmem [#allocation8], %s3093_s24 }
  0xde   : > { %2651 = dma.done.wait (%p3511_p12), %s506_s22, 1280  }
  0xdf   : > { %2653 = vsyncadd (%p3511_p12), %s506_s22, 4294966016  ;;  %s518_s12 = scalar_lea.vmem [#allocation10], %s3078_s21  ;;  %p3513_p8 = scmp.eq.s32.totalorder %s3512_s18, 0 }
  0xe1   : > { %2655 = dma.done.wait (%p3513_p8), [#allocation12], 128   ;;  %p3514_p4 = pmov %p3513_p8 }
  0xe2   : > { %s3515_s30 = sld [smem:[#allocation37_spill]]  ;;  %v3115_v1 = vld [vmem:[%s482_s3] sm:$0xff]  ;;  %v3117_v2 = vld [vmem:[%s482_s3 + $0x8] sm:$0xff]  ;;  %vm677_vm0 = vcmask 130048   ;;  %vm2701_vm1 = vmmov 0   ;;  %s3516_s6 = sld [smem:[#allocation35_spill]] }
  0xe3   : > { %2657 = vsyncadd (%p3514_p4), [#allocation12], 4294967168  ;;  %v3119_v3 = vld [vmem:[%s491_s9] sm:$0xff]  ;;  %v3123_v4 = vld [vmem:[%s491_s9 + $0x8] sm:$0xff]  ;;  %s3517_s10 = sld [smem:[#allocation36_spill]]  ;;  %s3283_s19 = scalar_lea.vmem [#allocation13], %s3093_s24 }
  0xe4   : > { %v595_v5 = vld [vmem:[%s3096_s17] sm:$0xff]  ;;  %v596_v6 = vld [vmem:[%s3096_s17 + $0x8] sm:$0xff]  ;;  %v597_v23 = vld [vmem:[%s3096_s17 + $0x10] sm:$0xff]  ;;  %s3292_s23 = scalar_lea.vmem [#allocation14], %s3093_s24  ;;  %s3518_s29 = sld [smem:[#allocation24_spill]] }
  0xe5   : > { %v603_v7 = vld [vmem:[%s3099_s16] sm:$0xff]  ;;  %v604_v8 = vld [vmem:[%s3099_s16 + $0x8] sm:$0xff]  ;;  %v615_v9 = vmul.f32 %v595_v5, %v3115_v1  ;;  %v616_v10 = vmul.f32 %v596_v6, %v3117_v2  ;;  %v647_v15 = vmul.f32 %v595_v5, %v3119_v3  ;;  %v598_v24 = vld [vmem:[%s3096_s17 + $0x18] sm:$0xff]  ;;  %v648_v28 = vmul.f32 %v596_v6, %v3123_v4  ;;  %s1747_s21 = sshll.u32 %s3292_s23, 4  ;;  %s3519_s25 = sld [smem:[#allocation31_spill]]  ;;  %s3336_s21 = int_to_ptr.vmem [resolvable:$true] %s1747_s21 }
  0xe6   : > { %v599_v11 = vld [vmem:[%s3096_s17 + $0x20] sm:$0xff]  ;;  %v623_v12 = vmul.f32 %v603_v7, %v3119_v3  ;;  %v624_v13 = vmul.f32 %v604_v8, %v3123_v4  ;;  %v639_v14 = vmul.f32 %v603_v7, %v3115_v1  ;;  %v600_v16 = vld [vmem:[%s3096_s17 + $0x28] sm:$0xff]  ;;  %v640_v19 = vmul.f32 %v604_v8, %v3117_v2  ;;  %v605_v25 = vld [vmem:[%s3099_s16 + $0x10] sm:$0xff]  ;;  %s3520_s28 = sld [smem:[#allocation39_spill]]  ;;  %s1712_s9 = scalar_lea.sflag [#allocation15], %s3075_s11 }
  0xe7   : > { %v607_v17 = vld [vmem:[%s3099_s16 + $0x20] sm:$0xff]  ;;  %v608_v18 = vld [vmem:[%s3099_s16 + $0x28] sm:$0xff]  ;;  %v619_v20 = vmul.f32 %v599_v11, %v3115_v1  ;;  %v620_v21 = vmul.f32 %v600_v16, %v3117_v2  ;;  %v606_v30 = vld [vmem:[%s3099_s16 + $0x18] sm:$0xff]  ;;  %v651_v36 = vmul.f32 %v599_v11, %v3119_v3  ;;  %v617_v41 = vmul.f32 %v597_v23, %v3115_v1  ;;  %s2562_s24 = scalar_lea.vmem %s3336_s21, 1024 }
  0xe8   : > { %v3113_v0 = vld [vmem:[%s3515_s30] sm:$0xff]   ;;  %v627_v22 = vmul.f32 %v607_v17, %v3119_v3  ;;  %v631_v26 = vsub.f32 %v615_v9, %v623_v12  ;;  %v632_v27 = vsub.f32 %v616_v10, %v624_v13  ;;  %v628_v29 = vmul.f32 %v608_v18, %v3123_v4  ;;  %v601_v31 = vld [vmem:[%s3096_s17 + $0x30] sm:$0xff]  ;;  %v602_v32 = vld [vmem:[%s3096_s17 + $0x38] sm:$0xff]  ;;  %p2563_p9 = scmp.ne.s32.totalorder %s3336_s21, %s2562_s24  ;;  %s2702_s17 = smov [#allocation14]  }
  0xe9   : > { %2112 = vmatprep.subr.bf16.mxu0 %v3113_v0  ;;  %2248 = vmatprep.subr.bf16.mxu1 %v3113_v0  ;;  %v643_v34 = vmul.f32 %v607_v17, %v3115_v1  ;;  %v644_v35 = vmul.f32 %v608_v18, %v3117_v2  ;;  %v609_v37 = vld [vmem:[%s3099_s16 + $0x30] sm:$0xff]  ;;  %v610_v38 = vld [vmem:[%s3099_s16 + $0x38] sm:$0xff]  ;;  %v618_v42 = vmul.f32 %v598_v24, %v3117_v2  ;;  %v2381_v43 = vld [vmem:[#allocation11] sm:$0xff]   ;;  %s2566_s22 = sshll.u32 %s2702_s17, 4  ;;  %s2567_s22 = int_to_ptr.vmem [resolvable:$false] %s2566_s22 }
  0xea   : > { %2113 = vmatpush3.bf16.msra.mxu0 %v3113_v0  ;;  %2249 = vmatpush3.bf16.msra.mxu1 %v3113_v0  ;;  %v635_v33 = vsub.f32 %v619_v20, %v627_v22  ;;  %v663_v39 = vpack.c.bf16 %v632_v27, %v631_v26  ;;  %v636_v40 = vsub.f32 %v620_v21, %v628_v29  ;;  %s2058_s26 = sshll.u32 %s3518_s29, 10  ;;  %s2568_s16 = scalar_lea.vmem %s2567_s22, 2048 }
  0xeb   : > { %2132 = vmatprep.subr.bf16.mxu0 %v3113_v0  ;;  %v625_v44 = vmul.f32 %v605_v25, %v3119_v3  ;;  %v626_v45 = vmul.f32 %v606_v30, %v3123_v4  ;;  %v641_v46 = vmul.f32 %v605_v25, %v3115_v1  ;;  %v642_v47 = vmul.f32 %v606_v30, %v3117_v2  ;;  %p3521_p13 = scmp.ne.s32.totalorder %s3519_s25, 0  ;;  %p2569_p6 = scmp.lt.s32.totalorder %s3336_s21, %s2567_s22 }
  0xec   : > { %2114 = vmatprep.mubr.msk.bf16.mxu0 %vm677_vm0, %v663_v39  ;;  %v665_v48 = vpack.c.bf16 %v636_v40, %v635_v33  ;;  %v649_v49 = vmul.f32 %v597_v23, %v3119_v3  ;;  %v650_v50 = vmul.f32 %v598_v24, %v3123_v4  ;;  %v621_v51 = vmul.f32 %v601_v31, %v3115_v1  ;;  %v3202_v33 = vld [vmem:[%s3516_s6] sm:$0xff]   ;;  %s3334_s1 = scalar_lea.hbm %s3520_s28, %s2058_s26  ;;  %p2570_p10 = scmp.lt.s32.totalorder %s2568_s16, %s2562_s24 }
  0xed   : > { %v633_v52 = vsub.f32 %v617_v41, %v625_v44  ;;  %v634_v53 = vsub.f32 %v618_v42, %v626_v45  ;;  %v622_v54 = vmul.f32 %v602_v32, %v3117_v2  ;;  %v629_v55 = vmul.f32 %v609_v37, %v3119_v3  ;;  %2122 = vmatprep.subr.bf16.mxu1 %v2381_v43  ;;  %p2564_p1 = pnand %p2563_p9, %p3521_p13 }
  0xee   : > { %v652_v56 = vmul.f32 %v600_v16, %v3123_v4  ;;  %2118 = vmatprep.mubr.msk.bf16.mxu1 %vm677_vm0, %v665_v48  ;;  %v630_v57 = vmul.f32 %v610_v38, %v3123_v4  ;;  %v655_v58 = vadd.f32 %v647_v15, %v639_v14  ;;  %v656_v59 = vadd.f32 %v648_v28, %v640_v19  ;;  %p2571_p5 = por %p2570_p10, %p2569_p6 }
  0xef   : > { %v664_v60 = vpack.c.bf16 %v634_v53, %v633_v52  ;;  %v637_v61 = vsub.f32 %v621_v51, %v629_v55  ;;  %v657_v5 = vadd.f32 %v649_v49, %v641_v46  ;;  %v658_v6 = vadd.f32 %v650_v50, %v642_v47  ;;  %v2383_v46 = vld [vmem:[%s3517_s10] sm:$0xff]   ;;  %p2565_p0 = pneg %p2564_p1 }
  0xf0   : > { %v638_v62 = vsub.f32 %v622_v54, %v630_v57  ;;  %v667_v63 = vpack.c.bf16 %v656_v59, %v655_v58  ;;  %v659_v8 = vadd.f32 %v651_v36, %v643_v34  ;;  %v660_v9 = vadd.f32 %v652_v56, %v644_v35 }
  0xf1   : > { %2115 = vmatmul.mubr.msk.bf16.vlgmr.msra.gmra.mrb[0].mxu0 %vm677_vm0, %v664_v60  ;;  %v668_v10 = vpack.c.bf16 %v658_v6, %v657_v5  ;;  %v645_v11 = vmul.f32 %v609_v37, %v3115_v1  ;;  %v646_v12 = vmul.f32 %v610_v38, %v3117_v2  ;;  %v653_v13 = vmul.f32 %v601_v31, %v3119_v3  ;;  %v3275_v6 = vld [vmem:[%s518_s12] sm:$0xff]  ;;  %p2572_p11 = pnand %p2571_p5, %p2565_p0 }
  0xf2   : > { %v666_v7 = vpack.c.bf16 %v638_v62, %v637_v61  ;;  %2133 = vmatpush3.bf16.msra.mxu0 %v3113_v0  ;;  %2134 = vmatprep.mubr.msk.bf16.mxu0 %vm677_vm0, %v667_v63  ;;  %v654_v14 = vmul.f32 %v602_v32, %v3123_v4  ;;  %v669_v0 = vpack.c.bf16 %v660_v9, %v659_v8  ;;  %v2700_v2 = vmov 0.0  }
  0xf3   : > { %2142 = vmatprep.subr.bf16.mxu0 %v2381_v43  ;;  %v661_v15 = vadd.f32 %v653_v13, %v645_v11 }
  0xf4   : > { %2119 = vmatmul.mubr.msk.bf16.vlgmr.msra.gmra.mrb[0].mxu1 %vm677_vm0, %v666_v7  ;;  %v662_v16 = vadd.f32 %v654_v14, %v646_v12 }
  0xf5   : > { %2123 = vmatpush3.bf16.msra.mxu1 %v2381_v43  ;;  %2124 = vmatprep.mubr.msk.bf16.mxu1 %vm677_vm0, %v667_v63 }
  0xf6   : > { %v670_v1 = vpack.c.bf16 %v662_v16, %v661_v15  ;;  %2152 = vmatprep.subr.bf16.mxu1 %v2700_v2 }
  0xf9   : > { %2135 = vmatmul.mubr.msk.bf16.vlgmr.msra.gmra.mrb[4].mxu0 %vm677_vm0, %v668_v10 }
  0xfa   : > { %2138 = vmatprep.mubr.msk.bf16.mxu0 %vm677_vm0, %v669_v0  ;;  %2143 = vmatpush3.bf16.msra.mxu0 %v2381_v43 }
  0xfb   : > { %2176 = vmatprep.subr.bf16.mxu0 %v2700_v2 }
  0xfc   : > { %2125 = vmatmul.mubr.msk.bf16.vlgmr.msra.gmra.mrb[4].mxu1 %vm677_vm0, %v668_v10  ;;  %v3279_v10 = vld [vmem:[%s518_s12 + $0x8] sm:$0xff] }
  0xfd   : > { %2128 = vmatprep.mubr.msk.bf16.mxu1 %vm677_vm0, %v669_v0 }
 0x101   : > { %2139 = vmatmul.mubr.msk.bf16.gmra.mrb[8].mxu0 %vm677_vm0, %v670_v1 }
 0x102   : > { %2144 = vmatprep.mubr.msk.bf16.mxu0 %vm677_vm0, %v663_v39 }
 0x104   : > { %2129 = vmatmul.mubr.msk.bf16.gmra.mrb[8].mxu1 %vm677_vm0, %v670_v1 }
 0x105   : > { %2154 = vmatprep.mubr.msk.bf16.mxu1 %vm2701_vm1, %v2700_v2 }
 0x109   : > { %2145 = vmatmul.mubr.msk.bf16.vlgmr.msra.gmra.mrb[4].mxu0 %vm677_vm0, %v664_v60 }
 0x10a   : > { %2148 = vmatprep.mubr.msk.bf16.mxu0 %vm677_vm0, %v665_v48 }
 0x111   : > { %2149 = vmatmul.mubr.msk.bf16.gmra.mrb[8].mxu0 %vm677_vm0, %v666_v7 }
 0x112   : > { %2178 = vmatprep.mubr.msk.bf16.mxu0 %vm2701_vm1, %v2700_v2 }
 0x1c4   : > { %v2116_v3 = vpop.f32.mrb[0].mxu0 }
 0x1c5   : > { %v724_v4 = vpop.f32.mrb[1].mxu0 }
 0x1c6   : > { %v2117_v17 = vpop.f32.mrb[2].mxu0 }
 0x1c7   : > { %v2120_v18 = vpop.f32.mrb[0].mxu1  ;;  %v727_v19 = vpop.f32.mrb[3].mxu0 }
 0x1c8   : > { %v740_v20 = vpop.f32.mrb[1].mxu1 }
 0x1c9   : > { %v2121_v21 = vpop.f32.mrb[2].mxu1 }
 0x1ca   : > { %v743_v22 = vpop.f32.mrb[3].mxu1 }
 0x1cf   : > { %v2126_v23 = vpop.f32.mrb[4].mxu1 }
 0x1d0   : > { %v840_v24 = vsub.f32 %v2116_v3, %v2126_v23  ;;  %v807_v25 = vpop.f32.mrb[5].mxu1 }
 0x1d1   : > { %v838_v26 = vsub.f32 %v724_v4, %v807_v25  ;;  %v2127_v27 = vpop.f32.mrb[6].mxu1 }
 0x1d2   : > { %v841_v28 = vsub.f32 %v2117_v17, %v2127_v27  ;;  %v810_v29 = vpop.f32.mrb[7].mxu1 }
 0x1d3   : > { %v839_v30 = vsub.f32 %v727_v19, %v810_v29 }
 0x1d4   : > { %v1172_v31 = vpack.c.bf16 %v841_v28, %v840_v24 }
 0x1d5   : > { %v980_v32 = vpack.c.bf16 %v839_v30, %v838_v26 }
 0x1d6   : > { %2177 = vmatpush3.bf16.msra.mxu0 %v1172_v31 }
 0x1d7   : > { %v2130_v34 = vpop.f32.mrb[8].mxu1  ;;  %2153 = vmatpush3.bf16.msra.mxu1 %v980_v32  ;;  %2188 = vmatprep.subr.bf16.mxu0 %v2700_v2 }
 0x1d8   : > { %v844_v35 = vsub.f32 %v2120_v18, %v2130_v34  ;;  %v823_v36 = vpop.f32.mrb[9].mxu1  ;;  %2158 = vmatprep.subr.bf16.mxu1 %v2700_v2 }
 0x1d9   : > { %v842_v37 = vsub.f32 %v740_v20, %v823_v36  ;;  %v2131_v38 = vpop.f32.mrb[10].mxu1  ;;  %2179 = vmatmul.mubr.msk.bf16.vlgmr.msra.gmra.mrb[12].mxu0 %vm677_vm0, %v3202_v33 }
 0x1da   : > { %v845_v39 = vsub.f32 %v2121_v21, %v2131_v38  ;;  %v826_v40 = vpop.f32.mrb[11].mxu1  ;;  %2189 = vmatpush3.bf16.msra.mxu0 %v1172_v31  ;;  %2155 = vmatmul.mubr.msk.bf16.vlgmr.msra.gmra.mrb[12].mxu1 %vm677_vm0, %v3202_v33 }
 0x1db   : > { %v843_v41 = vsub.f32 %v743_v22, %v826_v40  ;;  %2190 = vmatprep.mubr.msk.bf16.mxu0 %vm2701_vm1, %v2700_v2  ;;  %2194 = vmatprep.subr.bf16.mxu0 %v2700_v2 }
 0x1dc   : > { %v1528_v42 = vpack.c.bf16 %v845_v39, %v844_v35  ;;  %v2146_v43 = vpop.f32.mrb[4].mxu0  ;;  %2160 = vmatprep.mubr.msk.bf16.mxu1 %vm2701_vm1, %v2700_v2 }
 0x1dd   : > { %v1350_v44 = vpack.c.bf16 %v843_v41, %v842_v37  ;;  %v945_v45 = vpop.f32.mrb[5].mxu0 }
 0x1de   : > { %v2147_v47 = vpop.f32.mrb[6].mxu0 }
 0x1df   : > { %v1173_v48 = vpack.c.bf16 %v2147_v47, %v2146_v43  ;;  %v948_v49 = vpop.f32.mrb[7].mxu0 }
 0x1e0   : > { %v981_v50 = vpack.c.bf16 %v948_v49, %v945_v45 }
 0x1e1   : > { %2191 = vmatmul.mubr.msk.bf16.vlgmr.msra.gmra.mrb[16].mxu0 %vm677_vm0, %v2383_v46 }
 0x1e2   : > { %2195 = vmatpush3.bf16.msra.mxu0 %v1173_v48  ;;  %2159 = vmatpush3.bf16.msra.mxu1 %v981_v50 }
 0x1e3   : > { %2164 = vmatprep.subr.bf16.mxu1 %v2700_v2  ;;  %2196 = vmatprep.mubr.msk.bf16.mxu0 %vm2701_vm1, %v2700_v2 }
 0x1e4   : > { %v2150_v51 = vpop.f32.mrb[8].mxu0  ;;  %2212 = vmatprep.subr.bf16.mxu0 %v2700_v2 }
 0x1e5   : > { %v961_v52 = vpop.f32.mrb[9].mxu0  ;;  %2161 = vmatmul.mubr.msk.bf16.vlgmr.msra.gmra.mrb[16].mxu1 %vm677_vm0, %v2383_v46 }
 0x1e6   : > { %v2151_v53 = vpop.f32.mrb[10].mxu0  ;;  %2165 = vmatpush3.bf16.msra.mxu1 %v980_v32  ;;  %2166 = vmatprep.mubr.msk.bf16.mxu1 %vm2701_vm1, %v2700_v2 }
 0x1e7   : > { %v1529_v54 = vpack.c.bf16 %v2151_v53, %v2150_v51  ;;  %v964_v55 = vpop.f32.mrb[11].mxu0  ;;  %2170 = vmatprep.subr.bf16.mxu1 %v2700_v2 }
 0x1e8   : > { %v1351_v56 = vpack.c.bf16 %v964_v55, %v961_v52 }
 0x1ed   : > { %2197 = vmatmul.mubr.msk.bf16.vlgmr.msra.gmra.mrb[16].mxu0 %vm677_vm0, %v3202_v33  ;;  %2167 = vmatmul.mubr.msk.bf16.vlgmr.msra.gmra.mrb[20].mxu1 %vm677_vm0, %v2383_v46 }
 0x1ee   : > { %2213 = vmatpush3.bf16.msra.mxu0 %v1350_v44  ;;  %2171 = vmatpush3.bf16.msra.mxu1 %v981_v50 }
 0x1ef   : > { %2214 = vmatprep.mubr.msk.bf16.mxu0 %vm2701_vm1, %v2700_v2  ;;  %2218 = vmatprep.subr.bf16.mxu0 %v2700_v2 }
 0x1f0   : > { %2172 = vmatprep.mubr.msk.bf16.mxu1 %vm2701_vm1, %v2700_v2  ;;  %2182 = vmatprep.subr.bf16.mxu1 %v2700_v2 }
 0x1f5   : > { %2215 = vmatmul.mubr.msk.bf16.vlgmr.msra.gmra.mrb[20].mxu0 %vm677_vm0, %v2383_v46 }
 0x1f6   : > { %2219 = vmatpush3.bf16.msra.mxu0 %v1351_v56  ;;  %2220 = vmatprep.mubr.msk.bf16.mxu0 %vm2701_vm1, %v2700_v2 }
 0x1f7   : > { %2236 = vmatprep.subr.bf16.mxu0 %v2700_v2 }
 0x1f9   : > { %2173 = vmatmul.mubr.msk.bf16.vlgmr.msra.gmra.mrb[20].mxu1 %vm677_vm0, %v3202_v33 }
 0x1fa   : > { %2183 = vmatpush3.bf16.msra.mxu1 %v1173_v48  ;;  %2184 = vmatprep.mubr.msk.bf16.mxu1 %vm2701_vm1, %v2700_v2 }
 0x1fb   : > { %2200 = vmatprep.subr.bf16.mxu1 %v2700_v2 }
 0x201   : > { %2221 = vmatmul.mubr.msk.bf16.vlgmr.msra.gmra.mrb[20].mxu0 %vm677_vm0, %v3202_v33  ;;  %2185 = vmatmul.mubr.msk.bf16.vlgmr.msra.gmra.mrb[24].mxu1 %vm677_vm0, %v2383_v46 }
 0x202   : > { %2237 = vmatpush3.bf16.msra.mxu0 %v1528_v42  ;;  %2201 = vmatpush3.bf16.msra.mxu1 %v1350_v44 }
 0x203   : > { %2238 = vmatprep.mubr.msk.bf16.mxu0 %vm2701_vm1, %v2700_v2  ;;  %2242 = vmatprep.subr.bf16.mxu0 %v2700_v2 }
 0x204   : > { %2202 = vmatprep.mubr.msk.bf16.mxu1 %vm2701_vm1, %v2700_v2  ;;  %2206 = vmatprep.subr.bf16.mxu1 %v2700_v2 }
 0x209   : > { %2239 = vmatmul.mubr.msk.bf16.vlgmr.msra.gmra.mrb[24].mxu0 %vm677_vm0, %v2383_v46  ;;  %2203 = vmatmul.mubr.msk.bf16.vlgmr.msra.gmra.mrb[28].mxu1 %vm677_vm0, %v3202_v33 }
 0x20a   : > { %2243 = vmatpush3.bf16.msra.mxu0 %v1529_v54  ;;  %2207 = vmatpush3.bf16.msra.mxu1 %v1351_v56 }
 0x20b   : > { %2208 = vmatprep.mubr.msk.bf16.mxu1 %vm2701_vm1, %v2700_v2  ;;  %2224 = vmatprep.subr.bf16.mxu1 %v2700_v2 }
 0x20c   : > { %2244 = vmatprep.mubr.msk.bf16.mxu0 %vm2701_vm1, %v2700_v2 }
 0x211   : > { %2209 = vmatmul.mubr.msk.bf16.vlgmr.msra.gmra.mrb[32].mxu1 %vm677_vm0, %v2383_v46 }
 0x212   : > { %2225 = vmatpush3.bf16.msra.mxu1 %v1528_v42  ;;  %2226 = vmatprep.mubr.msk.bf16.mxu1 %vm2701_vm1, %v2700_v2 }
 0x213   : > { %2230 = vmatprep.subr.bf16.mxu1 %v2700_v2 }
 0x215   : > { %2245 = vmatmul.mubr.msk.bf16.vlgmr.msra.gmra.mrb[24].mxu0 %vm677_vm0, %v3202_v33 }
 0x219   : > { %2227 = vmatmul.mubr.msk.bf16.vlgmr.msra.gmra.mrb[36].mxu1 %vm677_vm0, %v3202_v33 }
 0x21a   : > { %2231 = vmatpush3.bf16.msra.mxu1 %v1529_v54  ;;  %2232 = vmatprep.mubr.msk.bf16.mxu1 %vm2701_vm1, %v2700_v2 }
 0x221   : > { %2233 = vmatmul.mubr.msk.bf16.vlgmr.msra.gmra.mrb[40].mxu1 %vm677_vm0, %v2383_v46 }
 0x2ac   : > { %v1208_v57 = vpop.f32.mrb[12].mxu0 }
 0x2ad   : > { %v1024_v58 = vpop.f32.mrb[12].mxu1  ;;  %v2180_v59 = vpop.f32.mrb[13].mxu0 }
 0x2ae   : > { %v2156_v60 = vpop.f32.mrb[13].mxu1  ;;  %v1211_v61 = vpop.f32.mrb[14].mxu0 }
 0x2af   : > { %v1027_v62 = vpop.f32.mrb[14].mxu1  ;;  %v2181_v63 = vpop.f32.mrb[15].mxu0 }
 0x2b0   : > { %v2157_v5 = vpop.f32.mrb[15].mxu1 }
 0x2b8   : > { %v1073_v7 = vpop.f32.mrb[16].mxu1 }
 0x2b9   : > { %v1080_v8 = vsub.f32 %v1024_v58, %v1073_v7  ;;  %v2162_v9 = vpop.f32.mrb[17].mxu1 }
 0x2ba   : > { %v1076_v11 = vpop.f32.mrb[18].mxu1 }
 0x2bb   : > { %v1082_v12 = vmul.f32 %v1080_v8, %v3275_v6  ;;  %v1081_v13 = vsub.f32 %v1027_v62, %v1076_v11  ;;  %v2163_v14 = vpop.f32.mrb[19].mxu1 }
 0x2bd   : > { %1084 = vst.msk [vmem:[%s3283_s19] sm:$0xff] %vm677_vm0, %v1082_v12  ;;  %v1083_v0 = vmul.f32 %v1081_v13, %v3279_v10 }
 0x2bf   : > { %1085 = vst.msk [vmem:[%s3283_s19 + $0x8] sm:$0xff] %vm677_vm0, %v1083_v0 }
 0x2c0   : > { %v1338_v15 = vpop.f32.mrb[16].mxu0 }
 0x2c1   : > { %v1345_v16 = vmul.f32 %v1338_v15, %v3275_v6  ;;  %v2198_v1 = vpop.f32.mrb[17].mxu0 }
 0x2c2   : > { %v1341_v2 = vpop.f32.mrb[18].mxu0 }
 0x2c3   : > { %2027 = vst.msk [vmem:[%s3292_s23 + $0x10] sm:$0xff] %vm677_vm0, %v1345_v16  ;;  %v1346_v3 = vmul.f32 %v1341_v2, %v3279_v10  ;;  %v2199_v4 = vpop.f32.mrb[19].mxu0 }
 0x2c5   : > { %2028 = vst.msk [vmem:[%s3292_s23 + $0x18] sm:$0xff] %vm677_vm0, %v1346_v3 }
 0x2cc   : > { %v1161_v17 = vpop.f32.mrb[20].mxu1 }
 0x2cd   : > { %v1168_v18 = vmul.f32 %v1161_v17, %v3275_v6  ;;  %v2174_v19 = vpop.f32.mrb[21].mxu1 }
 0x2ce   : > { %v1164_v20 = vpop.f32.mrb[22].mxu1 }
 0x2cf   : > { %1170 = vst.msk [vmem:[%s3292_s23] sm:$0xff] %vm677_vm0, %v1168_v18  ;;  %v1169_v21 = vmul.f32 %v1164_v20, %v3279_v10  ;;  %v2175_v22 = vpop.f32.mrb[23].mxu1 }
 0x2d1   : > { %1171 = vst.msk [vmem:[%s3292_s23 + $0x8] sm:$0xff] %vm677_vm0, %v1169_v21 }
 0x2d4   : > { %v1249_v23 = vpop.f32.mrb[24].mxu1  ;;  %v1516_v24 = vpop.f32.mrb[20].mxu0 }
 0x2d5   : > { %v1256_v25 = vsub.f32 %v1208_v57, %v1249_v23  ;;  %v2186_v26 = vpop.f32.mrb[25].mxu1  ;;  %v1523_v27 = vmul.f32 %v1516_v24, %v3275_v6  ;;  %v2222_v28 = vpop.f32.mrb[21].mxu0 }
 0x2d6   : > { %v1252_v29 = vpop.f32.mrb[26].mxu1  ;;  %v1519_v30 = vpop.f32.mrb[22].mxu0 }
 0x2d7   : > { %v1258_v31 = vmul.f32 %v1256_v25, %v3275_v6  ;;  %v1257_v32 = vsub.f32 %v1211_v61, %v1252_v29  ;;  %2035 = vst.msk [vmem:[%s3292_s23 + $0x20] sm:$0xff] %vm677_vm0, %v1523_v27  ;;  %v2187_v33 = vpop.f32.mrb[27].mxu1  ;;  %v1524_v34 = vmul.f32 %v1519_v30, %v3279_v10  ;;  %v2223_v35 = vpop.f32.mrb[23].mxu0 }
 0x2d9   : > { %2023 = vst.msk [vmem:[%s3283_s19 + $0x10] sm:$0xff] %vm677_vm0, %v1258_v31  ;;  %v1259_v36 = vmul.f32 %v1257_v32, %v3279_v10  ;;  %2036 = vst.msk [vmem:[%s3292_s23 + $0x28] sm:$0xff] %vm677_vm0, %v1524_v34 }
 0x2db   : > { %2024 = vst.msk [vmem:[%s3283_s19 + $0x18] sm:$0xff] %vm677_vm0, %v1259_v36 }
 0x2dc   : > { %v1386_v37 = vpop.f32.mrb[28].mxu1 }
 0x2dd   : > { %v2204_v38 = vpop.f32.mrb[29].mxu1 }
 0x2de   : > { %v1389_v39 = vpop.f32.mrb[30].mxu1 }
 0x2df   : > { %v2205_v40 = vpop.f32.mrb[31].mxu1 }
 0x2e4   : > { %v1427_v41 = vpop.f32.mrb[32].mxu1 }
 0x2e5   : > { %v1434_v42 = vsub.f32 %v1386_v37, %v1427_v41  ;;  %v2210_v43 = vpop.f32.mrb[33].mxu1 }
 0x2e6   : > { %v1430_v44 = vpop.f32.mrb[34].mxu1 }
 0x2e7   : > { %v1436_v45 = vmul.f32 %v1434_v42, %v3275_v6  ;;  %v1435_v46 = vsub.f32 %v1389_v39, %v1430_v44  ;;  %v2211_v47 = vpop.f32.mrb[35].mxu1 }
 0x2e8   : > { %v1694_v48 = vpop.f32.mrb[24].mxu0 }
 0x2e9   : > { %2031 = vst.msk [vmem:[%s3283_s19 + $0x20] sm:$0xff] %vm677_vm0, %v1436_v45  ;;  %v1437_v49 = vmul.f32 %v1435_v46, %v3279_v10  ;;  %v1701_v50 = vmul.f32 %v1694_v48, %v3275_v6  ;;  %v2246_v51 = vpop.f32.mrb[25].mxu0 }
 0x2ea   : > { %v1697_v52 = vpop.f32.mrb[26].mxu0 }
 0x2eb   : > { %2032 = vst.msk [vmem:[%s3283_s19 + $0x28] sm:$0xff] %vm677_vm0, %v1437_v49  ;;  %2043 = vst.msk [vmem:[%s3292_s23 + $0x30] sm:$0xff] %vm677_vm0, %v1701_v50  ;;  %v1702_v53 = vmul.f32 %v1697_v52, %v3279_v10  ;;  %v2247_v54 = vpop.f32.mrb[27].mxu0 }
 0x2ec   : > { %v1564_v55 = vpop.f32.mrb[36].mxu1 }
 0x2ed   : > { %2044 = vst.msk [vmem:[%s3292_s23 + $0x38] sm:$0xff] %vm677_vm0, %v1702_v53  ;;  %v2228_v56 = vpop.f32.mrb[37].mxu1 }
 0x2ee   : > { %v1567_v57 = vpop.f32.mrb[38].mxu1 }
 0x2ef   : > { %2575 = shalt.err (!%p2572_p11)
}
 0x2f0   : > { %s2576_s12 = scalar_lea.hbm %s3334_s1, 1024  ;;  %s2580_s30 = scalar_lea.hbm %s3520_s28, 2048 }
 0x2f1   : > { %p2577_p3 = scmp.ne.s32.totalorder %s3334_s1, %s2576_s12  ;;  %p2581_p12 = scmp.lt.u32.totalorder %s3334_s1, %s3520_s28 }
 0x2f2   : > { %p2582_p8 = scmp.lt.u32.totalorder %s2580_s30, %s2576_s12  ;;  %p2584_p9 = scmp.lt.u32.totalorder %s2576_s12, %s3334_s1 }
 0x2f3   : > { %p2578_p2 = pnand %p2577_p3, %p3521_p13 }
 0x2f4   : > { %p2583_p4 = por %p2582_p8, %p2581_p12 }
 0x2f5   : > { %p2579_p7 = pneg %p2578_p2 }
 0x2f6   : > { %p2585_p1 = por %p2584_p9, %p2583_p4 }
 0x2f8   : > { %p2586_p0 = pnand %p2585_p1, %p2579_p7 }
 0x2fa   : > { %2589 = shalt.err (!%p2586_p0)
}
 0x2fb   : > { %s2703_s6 = smov 128   ;;  %s2704_s5 = smov 8   ;;  %v2229_v58 = vpop.f32.mrb[39].mxu1 }
 0x2fc   : > { %2289 = dma.vmem_to_hbm [thread:$0]  (%p3521_p13), %s3336_s21, 1024, %s3334_s1, %s1712_s9, %s2703_s6, %s2703_s6, %s2704_s5   ;;  %v1605_v59 = vpop.f32.mrb[40].mxu1 }
 0x2fd   : > { %v1612_v60 = vsub.f32 %v1564_v55, %v1605_v59  ;;  %v2234_v61 = vpop.f32.mrb[41].mxu1  ;;  %s1728_s7 = sshll.u32 %s3283_s19, 4  ;;  %s3522_s3 = sld [smem:[#allocation38_spill]]  ;;  %s3379_s7 = int_to_ptr.vmem [resolvable:$true] %s1728_s7 }
 0x2fe   : > { %v1608_v62 = vpop.f32.mrb[42].mxu1  ;;  %s1707_s18 = scalar_lea.sflag [#allocation4], %s3075_s11  ;;  %s2590_s1 = scalar_lea.vmem %s3379_s7, 1024 }
 0x2ff   : > { %v1614_v63 = vmul.f32 %v1612_v60, %v3275_v6  ;;  %v1613_v5 = vsub.f32 %v1567_v57, %v1608_v62  ;;  %v2235_v7 = vpop.f32.mrb[43].mxu1  ;;  %p2591_p6 = scmp.ne.s32.totalorder %s3379_s7, %s2590_s1  ;;  %s2705_s9 = smov [#allocation13]  }
 0x300   : > { %s2594_s29 = sshll.u32 %s2705_s9, 4  ;;  %s2595_s29 = int_to_ptr.vmem [resolvable:$false] %s2594_s29 }
 0x301   : > { %2039 = vst.msk [vmem:[%s3283_s19 + $0x30] sm:$0xff] %vm677_vm0, %v1614_v63  ;;  %v1615_v8 = vmul.f32 %v1613_v5, %v3279_v10  ;;  %p2592_p10 = pnand %p2591_p6, %p3521_p13  ;;  %s2596_s24 = scalar_lea.vmem %s2595_s29, 2048 }
 0x302   : > { %p2597_p11 = scmp.lt.s32.totalorder %s3379_s7, %s2595_s29  ;;  %p2598_p3 = scmp.lt.s32.totalorder %s2596_s24, %s2590_s1 }
 0x303   : > { %s3377_s21 = scalar_lea.hbm %s3522_s3, %s2058_s26  ;;  %2040 = vst.msk [vmem:[%s3283_s19 + $0x38] sm:$0xff] %vm677_vm0, %v1615_v8  ;;  %p2593_p5 = pneg %p2592_p10 }
 0x304   : > { %p2599_p2 = por %p2598_p3, %p2597_p11 }
 0x306   : > { %p2600_p7 = pnand %p2599_p2, %p2593_p5 }
 0x308   : > { %2603 = shalt.err (!%p2600_p7)
}
 0x309   : > { %s2604_s19 = scalar_lea.hbm %s3377_s21, 1024  ;;  %s2608_s22 = scalar_lea.hbm %s3522_s3, 2048 }
 0x30a   : > { %p2605_p12 = scmp.ne.s32.totalorder %s3377_s21, %s2604_s19  ;;  %p2609_p9 = scmp.lt.u32.totalorder %s3377_s21, %s3522_s3 }
 0x30b   : > { %p2610_p1 = scmp.lt.u32.totalorder %s2608_s22, %s2604_s19  ;;  %p2612_p6 = scmp.lt.u32.totalorder %s2604_s19, %s3377_s21 }
 0x30c   : > { %p2606_p8 = pnand %p2605_p12, %p3521_p13 }
 0x30d   : > { %p2611_p0 = por %p2610_p1, %p2609_p9 }
 0x30e   : > { %p2607_p4 = pneg %p2606_p8 }
 0x30f   : > { %p2613_p10 = por %p2612_p6, %p2611_p0 }
 0x311   : > { %p2614_p5 = pnand %p2613_p10, %p2607_p4 }
 0x313   : > { %2617 = shalt.err (!%p2614_p5)
}
 0x314   : > { %2288 = dma.vmem_to_hbm [thread:$0]  (%p3521_p13), %s3379_s7, 1024, %s3377_s21, %s1707_s18, %s2703_s6, %s2703_s6, %s2704_s5  }
 0x315 PF: > { %s3523_s15 = sld [smem:[#allocation22_spill]]  ;;  %s3524_s20 = sld [smem:[#allocation32_spill]] }
 0x316   : > { %s3525_s30 = sld [smem:[#allocation26_spill]] }
 0x31b   : > { %s1762_s13 = sand.u32 1, %s3523_s15   ;;  %p3526_p11 = scmp.ne.s32.totalorder %s3524_s20, 0 }
 0x31c   : > { %p3527_p3 = scmp.ge.s32.totalorder %s3525_s30, 2  ;;  %s1763_s27 = scalar_lea.sflag [#allocation4], %s1762_s13 }
 0x31e   : > { %p2313_p2 = pnand %p3527_p3, %p3526_p11 }
 0x320   : > { %2659 = dma.done.wait (!%p2313_p2), %s1763_s27, 1024  }
 0x321   : > { %2661 = vsyncadd (!%p2313_p2), %s1763_s27, 4294966272  ;;  %s1772_s25 = scalar_lea.sflag [#allocation15], %s1762_s13 }
 0x322   : > { %2663 = dma.done.wait (!%p2313_p2), %s1772_s25, 1024  }
 0x323   : > { %2665 = vsyncadd (!%p2313_p2), %s1772_s25, 4294966272  ;;  %s37_s18 = sadd.s32 1, %s3525_s30   ;;  %s3528_s11 = sld [smem:[#allocation23_spill]] }
 0x324   : > { %p34_p7 = scmp.ge.s32.totalorder %s37_s18, 4   ;;  %s3529_s15 = sld [smem:[#allocation28_spill]] }
 0x325   : > { %s3530_s16 = sld [smem:[#allocation25_spill]]  ;;  %s3531_s17 = sld [smem:[#allocation27_spill]] }
 0x326   : > { %s3532_s13 = smov %s2672_s14  ;;  %36 = sbr.rel (!%p34_p7) target bundleno = 21 (0x15), region = 176 }
 0x329   : > { %s3533_s14 = smov %s3528_s11 }
 0x32d   :  { %1777 = vsyncpa [#allocation3], 1 }
 0x32e   :  { %1779 = vsyncpa [#allocation3 + $0x1], 1 }
 0x32f   :  { %1780 = vsyncpa [#allocation6], 1 }
 0x330   :  { %1782 = vsyncpa [#allocation6 + $0x1], 1 }
 0x331   :  { %1783 = vsyncpa [#allocation9], 1 }
 0x332   :  { %1785 = vsyncpa [#allocation9 + $0x1], 1 }
 0x333   :  { %1786 = vsyncpa [#allocation12], 1 }
 0x334   :  { %1787 = vsyncpa [#allocation4], 1 }
 0x335   :  { %1789 = vsyncpa [#allocation4 + $0x1], 1 }
 0x336   :  { %1790 = vsyncpa [#allocation15], 1 }
 0x337   :  { %1792 = vsyncpa [#allocation15 + $0x1], 1 }

</bundles_post_ra>
